<compile_context>
chip_gen: v7x
topology: tpu7x:2x2x1
jax: 0.10.0
libtpu: 0.0.40
codegen_flags: <defaults>
</compile_context>

<pallas_src>
import jax
import jax.numpy as jnp
from jax import lax
from jax.experimental import pallas as pl
from jax.experimental.pallas import tpu as pltpu

LANE = 128
BSUB = 16  # batch-tile granularity: safe sublane multiple for bf16 (16,128) tiling


def _round_up(x, m):
    return (x + m - 1) // m * m


def _sigmoid(x):
    # sigmoid(x) == 0.5 * tanh(0.5 * x) + 0.5  (single EUP tanh + VPU FMA)
    return 0.5 * jnp.tanh(0.5 * x) + 0.5


def bilstm_kernel(maxlen_ref,                       # SMEM (num_tiles,) int32  [scalar prefetch]
                  len_ref,                          # VMEM (BT, 1) int32
                  x_ref,                            # VMEM (T, BT, Ep) bf16
                  wih_f_ref, whh_f_ref, b_f_ref,    # (Ep,4Hp) bf16, (Hp,4Hp) bf16, (1,4Hp) f32
                  wih_b_ref, whh_b_ref, b_b_ref,
                  wh_ref, bh_ref,                   # (2Hp,Cp) bf16, (1,Cp) f32
                  o_ref,                            # VMEM (T, BT, Cp) f32
                  gx_f_ref, gx_b_ref,               # scratch VMEM (T, BT, 4Hp) bf16
                  hs_f_ref, hs_b_ref,               # scratch VMEM (T, BT, Hp)  bf16
                  hf_ref, cf_ref, hb_ref, cb_ref):  # scratch VMEM (BT, Hp) f32 carries
    T, BT, Ep = x_ref.shape
    Hp = whh_f_ref.shape[0]
    Cp = wh_ref.shape[1]
    f32 = jnp.float32

    lens = len_ref[...]                                       # (BT, 1) int32 per-row lengths
    L = jnp.minimum(maxlen_ref[pl.program_id(0)], T)          # max valid length in this tile

    # ---- hoisted input projections: one large bf16 MXU matmul per direction,
    #      bias folded in, staged (bf16) in VMEM scratch ----
    x2 = x_ref[...].reshape(T * BT, Ep)
    gx_f_ref[...] = (jnp.dot(x2, wih_f_ref[...], preferred_element_type=f32)
                     + b_f_ref[...]).astype(gx_f_ref.dtype).reshape(T, BT, 4 * Hp)
    gx_b_ref[...] = (jnp.dot(x2, wih_b_ref[...], preferred_element_type=f32)
                     + b_b_ref[...]).astype(gx_b_ref.dtype).reshape(T, BT, 4 * Hp)

    # loop-invariant hoists
    whh_f = whh_f_ref[...]
    whh_b = whh_b_ref[...]

    # zero the f32 carries every grid step (scratch persists across iterations)
    hf_ref[...] = jnp.zeros_like(hf_ref)
    cf_ref[...] = jnp.zeros_like(cf_ref)
    hb_ref[...] = jnp.zeros_like(hb_ref)
    cb_ref[...] = jnp.zeros_like(cb_ref)

    # positions >= L are never written by the recurrence -> pre-zero hs once
    @pl.when(L < T)
    def _():
        hs_f_ref[...] = jnp.zeros_like(hs_f_ref)
        hs_b_ref[...] = jnp.zeros_like(hs_b_ref)

    def gates_to_hc(gates, c):
        # gate order i, f, g, o — each slice is 128-lane aligned (Hp % 128 == 0)
        i = _sigmoid(gates[:, 0:Hp])
        f = _sigmoid(gates[:, Hp:2 * Hp])
        g = jnp.tanh(gates[:, 2 * Hp:3 * Hp])
        o = _sigmoid(gates[:, 3 * Hp:4 * Hp])
        c_new = f * c + i * g
        h_new = o * jnp.tanh(c_new)
        return h_new, c_new

    # ---- fused forward/backward recurrence over the valid range only:
    #      fwd step t_f = s, bwd step t_b = L-1-s.  Per-row masking reproduces
    #      pack_padded_sequence: state only updates for t < length and padded
    #      positions hold exact zeros in hs_*.
    def step(s, carry):
        t_f = s
        t_b = L - 1 - s

        hf = hf_ref[...]
        cf = cf_ref[...]
        hb = hb_ref[...]
        cb = cb_ref[...]

        gates_f = gx_f_ref[t_f].astype(f32) + jnp.dot(
            hf.astype(jnp.bfloat16), whh_f, preferred_element_type=f32)
        gates_b = gx_b_ref[t_b].astype(f32) + jnp.dot(
            hb.astype(jnp.bfloat16), whh_b, preferred_element_type=f32)
        hf_new, cf_new = gates_to_hc(gates_f, cf)
        hb_new, cb_new = gates_to_hc(gates_b, cb)

        valid_f = t_f < lens                                  # (BT, 1) bool, per-row
        valid_b = t_b < lens

        hf_ref[...] = jnp.where(valid_f, hf_new, hf)
        cf_ref[...] = jnp.where(valid_f, cf_new, cf)
        hb_ref[...] = jnp.where(valid_b, hb_new, hb)
        cb_ref[...] = jnp.where(valid_b, cb_new, cb)

        hs_f_ref[t_f] = jnp.where(valid_f, hf_new, 0.0).astype(hs_f_ref.dtype)
        hs_b_ref[t_b] = jnp.where(valid_b, hb_new, 0.0).astype(hs_b_ref.dtype)
        return carry

    lax.fori_loop(0, L, step, 0)

    # ---- linear head on concat([h_fwd, h_bwd], -1) as split bf16 matmuls over the
    #      whole (T*BT, Hp) tile; lane-dense (Cp % 128 == 0) single store.
    hsf2 = hs_f_ref[...].reshape(T * BT, Hp)
    hsb2 = hs_b_ref[...].reshape(T * BT, Hp)
    logits = (jnp.dot(hsf2, wh_ref[0:Hp, :], preferred_element_type=f32)
              + jnp.dot(hsb2, wh_ref[Hp:2 * Hp, :], preferred_element_type=f32)
              + bh_ref[...])
    o_ref[...] = logits.reshape(T, BT, Cp).astype(o_ref.dtype)


def _pad_gate_cols(w, H, Hp):
    """(..., 4H) -> (..., 4Hp): each of the i/f/g/o blocks zero-padded to Hp columns."""
    parts = []
    for k in range(4):
        blk = w[..., k * H:(k + 1) * H]
        pad = [(0, 0)] * (w.ndim - 1) + [(0, Hp - H)]
        parts.append(jnp.pad(blk, pad))
    return jnp.concatenate(parts, axis=-1)


def _pick_vmem_limit():
    cap = 128 * 1024 * 1024
    try:
        info = pltpu.get_tpu_info()
        cap = int(getattr(info, "vmem_capacity_bytes", cap) or cap)
    except Exception:
        pass
    # leave ~1/8 headroom for compiler-internal scratch (56 MiB on v7x, 112 MiB on v5e/v6e)
    return min(cap * 7 // 8, 112 * 1024 * 1024)


def _pick_batch_tile(B, T, Ep, Hp, Cp, vmem_limit):
    """Largest batch tile (multiple of 16) whose VMEM footprint fits the budget;
    split into >=2 grid steps when the batch allows it (v7x has 2 TensorCores)."""
    budget = int(vmem_limit * 0.7)

    def vmem_est(bt):
        scratch = (2 * T * bt * 4 * Hp * 2      # gx fwd+bwd (bf16)
                   + 2 * T * bt * Hp * 2        # hs fwd+bwd (bf16)
                   + 4 * bt * Hp * 4)           # h/c carries (f32)
        io = 2 * (T * bt * Ep * 2) + 2 * (T * bt * Cp * 4) + 2 * bt * 4   # double-buffered blocks
        wts = 2 * (2 * (Ep + Hp) * 4 * Hp * 2 + 2 * Hp * Cp * 2 + (8 * Hp + Cp) * 4)
        return scratch + io + wts

    bt = min(128, _round_up(B, BSUB))
    while bt > BSUB and vmem_est(bt) > budget:
        bt -= BSUB
    bt = max(bt, BSUB)
    b_pad = _round_up(B, bt)
    if b_pad // bt < 2 and B > BSUB:
        bt2 = _round_up((B + 1) // 2, BSUB)
        if bt2 < bt or vmem_est(bt2) <= budget:
            bt = bt2
            b_pad = _round_up(B, bt)
    # TODO(synk): time-chunk the gx/hs scratch for very long T where even bt=16 overflows VMEM.
    return bt, b_pad


def bilstm_forward(x_tokens, x_length, params):
    E = params["embedding"].shape[1]
    H = params["whh_f"].shape[0]
    C = params["w_head"].shape[1]
    B, T = x_tokens.shape

    Ep = _round_up(E, LANE)
    Hp = _round_up(H, LANE)
    Cp = _round_up(C, LANE)

    vmem_limit = _pick_vmem_limit()
    BT, B_pad = _pick_batch_tile(B, T, Ep, Hp, Cp, vmem_limit)
    num_tiles = B_pad // BT

    f32 = jnp.float32
    bf16 = jnp.bfloat16

    # ---- lane/gate padding of the weights (zero pads are mathematically inert),
    #      MXU operands cast to bf16, biases kept f32 ----
    emb = jnp.pad(params["embedding"], ((0, 0), (0, Ep - E))).astype(bf16)
    wih_f = _pad_gate_cols(jnp.pad(params["wih_f"], ((0, Ep - E), (0, 0))), H, Hp).astype(bf16)
    whh_f = _pad_gate_cols(jnp.pad(params["whh_f"], ((0, Hp - H), (0, 0))), H, Hp).astype(bf16)
    b_f = _pad_gate_cols(params["b_f"], H, Hp).astype(f32)
    wih_b = _pad_gate_cols(jnp.pad(params["wih_b"], ((0, Ep - E), (0, 0))), H, Hp).astype(bf16)
    whh_b = _pad_gate_cols(jnp.pad(params["whh_b"], ((0, Hp - H), (0, 0))), H, Hp).astype(bf16)
    b_b = _pad_gate_cols(params["b_b"], H, Hp).astype(f32)
    wh = jnp.concatenate(
        [jnp.pad(params["w_head"][:H], ((0, Hp - H), (0, Cp - C))),
         jnp.pad(params["w_head"][H:], ((0, Hp - H), (0, Cp - C)))], axis=0).astype(bf16)
    bh = jnp.pad(params["b_head"], ((0, 0), (0, Cp - C))).astype(f32)

    # ---- embedding gather directly in time-major bf16 (glue, plain JAX) ----
    x_tm = jnp.take(emb, x_tokens.T, axis=0)                   # (T, B, Ep) bf16
    x_in = jnp.pad(x_tm, ((0, 0), (0, B_pad - B), (0, 0)))     # (T, B_pad, Ep)
    lens_in = jnp.pad(x_length.astype(jnp.int32), (0, B_pad - B)).reshape(B_pad, 1)
    maxlen = jnp.max(lens_in.reshape(num_tiles, BT), axis=1).astype(jnp.int32)  # per-tile

    grid_spec = pltpu.PrefetchScalarGridSpec(
        num_scalar_prefetch=1,
        grid=(num_tiles,),
        in_specs=[
            pl.BlockSpec((BT, 1), lambda b, ml: (b, 0)),              # lengths
            pl.BlockSpec((T, BT, Ep), lambda b, ml: (0, b, 0)),       # embeddings (time-major)
            pl.BlockSpec((Ep, 4 * Hp), lambda b, ml: (0, 0)),         # grid-invariant weights
            pl.BlockSpec((Hp, 4 * Hp), lambda b, ml: (0, 0)),
            pl.BlockSpec((1, 4 * Hp), lambda b, ml: (0, 0)),
            pl.BlockSpec((Ep, 4 * Hp), lambda b, ml: (0, 0)),
            pl.BlockSpec((Hp, 4 * Hp), lambda b, ml: (0, 0)),
            pl.BlockSpec((1, 4 * Hp), lambda b, ml: (0, 0)),
            pl.BlockSpec((2 * Hp, Cp), lambda b, ml: (0, 0)),
            pl.BlockSpec((1, Cp), lambda b, ml: (0, 0)),
        ],
        out_specs=pl.BlockSpec((T, BT, Cp), lambda b, ml: (0, b, 0)),
        scratch_shapes=[
            pltpu.VMEM((T, BT, 4 * Hp), jnp.bfloat16),   # gx forward
            pltpu.VMEM((T, BT, 4 * Hp), jnp.bfloat16),   # gx backward
            pltpu.VMEM((T, BT, Hp), jnp.bfloat16),       # hs forward
            pltpu.VMEM((T, BT, Hp), jnp.bfloat16),       # hs backward
            pltpu.VMEM((BT, Hp), jnp.float32),           # h fwd carry
            pltpu.VMEM((BT, Hp), jnp.float32),           # c fwd carry
            pltpu.VMEM((BT, Hp), jnp.float32),           # h bwd carry
            pltpu.VMEM((BT, Hp), jnp.float32),           # c bwd carry
        ],
    )

    out = pl.pallas_call(
        bilstm_kernel,
        out_shape=jax.ShapeDtypeStruct((T, B_pad, Cp), jnp.float32),
        grid_spec=grid_spec,
        compiler_params=pltpu.CompilerParams(
            dimension_semantics=("parallel",),      # batch tiles independent (v7x 2 TCs)
            vmem_limit_bytes=vmem_limit,            # per-generation limit with headroom
        ),
    )(maxlen, lens_in, x_in, wih_f, whh_f, b_f, wih_b, whh_b, b_b, wh, bh)

    # back to (B, T, C), dropping batch / lane padding
    return jnp.transpose(out, (1, 0, 2))[:B, :, :C]


def make_params(key, vocab, embed_dim, hidden, num_classes):
    ks = jax.random.split(key, 12)
    s = 0.1
    f32 = jnp.float32

    def rnd(k, shape):
        return jax.random.normal(k, shape, dtype=f32) * s

    # PyTorch LSTM weights are (4H, in); stored transposed here for x @ W.
    return {
        "embedding": rnd(ks[0], (vocab, embed_dim)),
        "wih_f": rnd(ks[1], (embed_dim, 4 * hidden)),
        "whh_f": rnd(ks[2], (hidden, 4 * hidden)),
        "b_f": rnd(ks[3], (1, 4 * hidden)) + rnd(ks[4], (1, 4 * hidden)),   # b_ih + b_hh
        "wih_b": rnd(ks[5], (embed_dim, 4 * hidden)),
        "whh_b": rnd(ks[6], (hidden, 4 * hidden)),
        "b_b": rnd(ks[7], (1, 4 * hidden)) + rnd(ks[8], (1, 4 * hidden)),
        "w_head": rnd(ks[9], (2 * hidden, num_classes)),
        "b_head": rnd(ks[10], (1, num_classes)),
    }


def bilstm_reference(x_tokens, x_length, params):
    """Pure-JAX f32 reference of the same semantics (for a sanity check)."""
    embed = jnp.take(params["embedding"], x_tokens, axis=0)
    B, T, E = embed.shape
    H = params["whh_f"].shape[0]

    def cell(x_t, h, c, wih, whh, bias):
        g = x_t @ wih + h @ whh + bias
        i = jax.nn.sigmoid(g[:, 0:H])
        f = jax.nn.sigmoid(g[:, H:2 * H])
        gg = jnp.tanh(g[:, 2 * H:3 * H])
        o = jax.nn.sigmoid(g[:, 3 * H:4 * H])
        c = f * c + i * gg
        return o * jnp.tanh(c), c

    outs = []
    for b in range(B):
        L = int(x_length[b])
        hf = jnp.zeros((1, H)); cf = jnp.zeros((1, H))
        hs_f = []
        for t in range(T):
            if t < L:
                hf, cf = cell(embed[b, t:t + 1], hf, cf,
                              params["wih_f"], params["whh_f"], params["b_f"])
                hs_f.append(hf)
            else:
                hs_f.append(jnp.zeros((1, H)))
        hb = jnp.zeros((1, H)); cb = jnp.zeros((1, H))
        hs_b = [None] * T
        for t in range(T - 1, -1, -1):
            if t < L:
                hb, cb = cell(embed[b, t:t + 1], hb, cb,
                              params["wih_b"], params["whh_b"], params["b_b"])
                hs_b[t] = hb
            else:
                hs_b[t] = jnp.zeros((1, H))
        rnn = jnp.concatenate([jnp.concatenate(hs_f, 0),
                               jnp.concatenate(hs_b, 0)], axis=-1)  # (T, 2H)
        outs.append(rnn @ params["w_head"] + params["b_head"])
    return jnp.stack(outs, axis=0)


if __name__ == "__main__":
    B, T, E, H, V, C = 2, 8, 32, 32, 50, 8
    key = jax.random.PRNGKey(0)
    kp, kx = jax.random.split(key)
    params = make_params(kp, V, E, H, C)

    x_tokens = jax.random.randint(kx, (B, T), 0, V, dtype=jnp.int32)
    x_length = jnp.array([T, 5], dtype=jnp.int32)

    logits = bilstm_forward(x_tokens, x_length, params)
    logits = jax.block_until_ready(logits)

    ref = bilstm_reference(x_tokens, x_length, params)
    assert logits.shape == (B, T, C)
    assert bool(jnp.all(jnp.isfinite(logits)))
    # bf16 MXU operands vs f32 reference -> modestly relaxed tolerance
    assert bool(jnp.allclose(logits, ref, rtol=5e-3, atol=5e-3))
    print("KERNEL_OK")
</pallas_src>

<mosaic_0001>
module attributes {stable_mosaic.version = 11 : i64} {
  func.func @bilstm_kernel(%arg0: i32, %arg1: memref<1xi32, #tpu.memory_space<smem>>, %arg2: memref<16x1xi32, #tpu.memory_space<vmem>>, %arg3: memref<8x16x128xbf16, #tpu.memory_space<vmem>>, %arg4: memref<128x512xbf16, #tpu.memory_space<vmem>>, %arg5: memref<128x512xbf16, #tpu.memory_space<vmem>>, %arg6: memref<1x512xf32, #tpu.memory_space<vmem>>, %arg7: memref<128x512xbf16, #tpu.memory_space<vmem>>, %arg8: memref<128x512xbf16, #tpu.memory_space<vmem>>, %arg9: memref<1x512xf32, #tpu.memory_space<vmem>>, %arg10: memref<256x128xbf16, #tpu.memory_space<vmem>>, %arg11: memref<1x128xf32, #tpu.memory_space<vmem>>, %arg12: memref<8x16x128xf32, #tpu.memory_space<vmem>>, %arg13: memref<8x16x512xbf16, #tpu.memory_space<vmem>>, %arg14: memref<8x16x512xbf16, #tpu.memory_space<vmem>>, %arg15: memref<8x16x128xbf16, #tpu.memory_space<vmem>>, %arg16: memref<8x16x128xbf16, #tpu.memory_space<vmem>>, %arg17: memref<16x128xf32, #tpu.memory_space<vmem>>, %arg18: memref<16x128xf32, #tpu.memory_space<vmem>>, %arg19: memref<16x128xf32, #tpu.memory_space<vmem>>, %arg20: memref<16x128xf32, #tpu.memory_space<vmem>>) attributes {dimension_semantics = [#tpu.dimension_semantics<parallel>], iteration_bounds = array<i64: 1>, scalar_prefetch = 1 : i64, scratch_operands = 8 : i64, tpu.core_type = #tpu.core_type<tc>, window_params = [{transform_indices = @transform_0, window_bounds = array<i64: 16, 1>}, {transform_indices = @transform_1, window_bounds = array<i64: 8, 16, 128>}, {pipeline_mode = #tpu.pipeline_mode<synchronous>, transform_indices = @transform_2, window_bounds = array<i64: 128, 512>}, {pipeline_mode = #tpu.pipeline_mode<synchronous>, transform_indices = @transform_3, window_bounds = array<i64: 128, 512>}, {pipeline_mode = #tpu.pipeline_mode<synchronous>, transform_indices = @transform_4, window_bounds = array<i64: 1, 512>}, {pipeline_mode = #tpu.pipeline_mode<synchronous>, transform_indices = @transform_5, window_bounds = array<i64: 128, 512>}, {pipeline_mode = #tpu.pipeline_mode<synchronous>, transform_indices = @transform_6, window_bounds = array<i64: 128, 512>}, {pipeline_mode = #tpu.pipeline_mode<synchronous>, transform_indices = @transform_7, window_bounds = array<i64: 1, 512>}, {pipeline_mode = #tpu.pipeline_mode<synchronous>, transform_indices = @transform_8, window_bounds = array<i64: 256, 128>}, {pipeline_mode = #tpu.pipeline_mode<synchronous>, transform_indices = @transform_9, window_bounds = array<i64: 1, 128>}, {transform_indices = @transform_10, window_bounds = array<i64: 8, 16, 128>}]} {
    %c0 = arith.constant 0 : index
    %c0_0 = arith.constant 0 : index
    %0 = vector.load %arg2[%c0, %c0_0] : memref<16x1xi32, #tpu.memory_space<vmem>>, vector<16x1xi32>
    %1 = arith.index_cast %arg0 : i32 to index
    %2 = memref.load %arg1[%1] : memref<1xi32, #tpu.memory_space<smem>>
    %c8_i32 = arith.constant 8 : i32
    %3 = arith.minsi %2, %c8_i32 : i32
    %c0_1 = arith.constant 0 : index
    %c0_2 = arith.constant 0 : index
    %c0_3 = arith.constant 0 : index
    %4 = vector.load %arg3[%c0_1, %c0_2, %c0_3] : memref<8x16x128xbf16, #tpu.memory_space<vmem>>, vector<8x16x128xbf16>
    %5 = vector.shape_cast %4 : vector<8x16x128xbf16> to vector<128x128xbf16>
    %c0_4 = arith.constant 0 : index
    %c0_5 = arith.constant 0 : index
    %6 = vector.load %arg4[%c0_4, %c0_5] : memref<128x512xbf16, #tpu.memory_space<vmem>>, vector<128x512xbf16>
    %cst = arith.constant dense<0.000000e+00> : vector<128x512xf32>
    %7 = tpu.matmul %5, %6, %cst {dimension_numbers = #tpu.dot_dimension_numbers<[1], [0], [0], [1], [0, 0, 1, 1], [], []>} : vector<128x128xbf16>, vector<128x512xbf16>, vector<128x512xf32> -> vector<128x512xf32>
    %c0_6 = arith.constant 0 : index
    %c0_7 = arith.constant 0 : index
    %8 = vector.load %arg6[%c0_6, %c0_7] : memref<1x512xf32, #tpu.memory_space<vmem>>, vector<1x512xf32>
    %9 = vector.broadcast %8 : vector<1x512xf32> to vector<128x512xf32>
    %10 = arith.addf %7, %9 : vector<128x512xf32>
    %11 = arith.truncf %10 : vector<128x512xf32> to vector<128x512xbf16>
    %12 = vector.shape_cast %11 : vector<128x512xbf16> to vector<8x16x512xbf16>
    %c0_8 = arith.constant 0 : index
    %c0_9 = arith.constant 0 : index
    %c0_10 = arith.constant 0 : index
    %13 = vector.load %arg13[%c0_8, %c0_9, %c0_10] : memref<8x16x512xbf16, #tpu.memory_space<vmem>>, vector<8x16x512xbf16>
    tpu.vector_store %arg13[%c0_8, %c0_9, %c0_10], %12 {strides = array<i32>} : memref<8x16x512xbf16, #tpu.memory_space<vmem>>, vector<8x16x512xbf16>,
    %c0_11 = arith.constant 0 : index
    %c0_12 = arith.constant 0 : index
    %14 = vector.load %arg7[%c0_11, %c0_12] : memref<128x512xbf16, #tpu.memory_space<vmem>>, vector<128x512xbf16>
    %cst_13 = arith.constant dense<0.000000e+00> : vector<128x512xf32>
    %15 = tpu.matmul %5, %14, %cst_13 {dimension_numbers = #tpu.dot_dimension_numbers<[1], [0], [0], [1], [0, 0, 1, 1], [], []>} : vector<128x128xbf16>, vector<128x512xbf16>, vector<128x512xf32> -> vector<128x512xf32>
    %c0_14 = arith.constant 0 : index
    %c0_15 = arith.constant 0 : index
    %16 = vector.load %arg9[%c0_14, %c0_15] : memref<1x512xf32, #tpu.memory_space<vmem>>, vector<1x512xf32>
    %17 = vector.broadcast %16 : vector<1x512xf32> to vector<128x512xf32>
    %18 = arith.addf %15, %17 : vector<128x512xf32>
    %19 = arith.truncf %18 : vector<128x512xf32> to vector<128x512xbf16>
    %20 = vector.shape_cast %19 : vector<128x512xbf16> to vector<8x16x512xbf16>
    %c0_16 = arith.constant 0 : index
    %c0_17 = arith.constant 0 : index
    %c0_18 = arith.constant 0 : index
    %21 = vector.load %arg14[%c0_16, %c0_17, %c0_18] : memref<8x16x512xbf16, #tpu.memory_space<vmem>>, vector<8x16x512xbf16>
    tpu.vector_store %arg14[%c0_16, %c0_17, %c0_18], %20 {strides = array<i32>} : memref<8x16x512xbf16, #tpu.memory_space<vmem>>, vector<8x16x512xbf16>,
    %c0_19 = arith.constant 0 : index
    %c0_20 = arith.constant 0 : index
    %22 = vector.load %arg5[%c0_19, %c0_20] : memref<128x512xbf16, #tpu.memory_space<vmem>>, vector<128x512xbf16>
    %c0_21 = arith.constant 0 : index
    %c0_22 = arith.constant 0 : index
    %23 = vector.load %arg8[%c0_21, %c0_22] : memref<128x512xbf16, #tpu.memory_space<vmem>>, vector<128x512xbf16>
    %cst_23 = arith.constant 0.000000e+00 : f32
    %24 = vector.broadcast %cst_23 : f32 to vector<16x128xf32>
    %c0_24 = arith.constant 0 : index
    %c0_25 = arith.constant 0 : index
    %25 = vector.load %arg17[%c0_24, %c0_25] : memref<16x128xf32, #tpu.memory_space<vmem>>, vector<16x128xf32>
    tpu.vector_store %arg17[%c0_24, %c0_25], %24 {strides = array<i32>} : memref<16x128xf32, #tpu.memory_space<vmem>>, vector<16x128xf32>,
    %cst_26 = arith.constant 0.000000e+00 : f32
    %26 = vector.broadcast %cst_26 : f32 to vector<16x128xf32>
    %c0_27 = arith.constant 0 : index
    %c0_28 = arith.constant 0 : index
    %27 = vector.load %arg18[%c0_27, %c0_28] : memref<16x128xf32, #tpu.memory_space<vmem>>, vector<16x128xf32>
    tpu.vector_store %arg18[%c0_27, %c0_28], %26 {strides = array<i32>} : memref<16x128xf32, #tpu.memory_space<vmem>>, vector<16x128xf32>,
    %cst_29 = arith.constant 0.000000e+00 : f32
    %28 = vector.broadcast %cst_29 : f32 to vector<16x128xf32>
    %c0_30 = arith.constant 0 : index
    %c0_31 = arith.constant 0 : index
    %29 = vector.load %arg19[%c0_30, %c0_31] : memref<16x128xf32, #tpu.memory_space<vmem>>, vector<16x128xf32>
    tpu.vector_store %arg19[%c0_30, %c0_31], %28 {strides = array<i32>} : memref<16x128xf32, #tpu.memory_space<vmem>>, vector<16x128xf32>,
    %cst_32 = arith.constant 0.000000e+00 : f32
    %30 = vector.broadcast %cst_32 : f32 to vector<16x128xf32>
    %c0_33 = arith.constant 0 : index
    %c0_34 = arith.constant 0 : index
    %31 = vector.load %arg20[%c0_33, %c0_34] : memref<16x128xf32, #tpu.memory_space<vmem>>, vector<16x128xf32>
    tpu.vector_store %arg20[%c0_33, %c0_34], %30 {strides = array<i32>} : memref<16x128xf32, #tpu.memory_space<vmem>>, vector<16x128xf32>,
    %c8_i32_35 = arith.constant 8 : i32
    %32 = arith.cmpi slt, %3, %c8_i32_35 : i32
    %33 = arith.extui %32 : i1 to i32
    %c0_i32 = arith.constant 0 : i32
    %34 = arith.cmpi ne, %33, %c0_i32 : i32
    scf.if %34 {
      %cst_54 = arith.constant 0.000000e+00 : bf16
      %51 = vector.broadcast %cst_54 : bf16 to vector<8x16x128xbf16>
      %c0_55 = arith.constant 0 : index
      %c0_56 = arith.constant 0 : index
      %c0_57 = arith.constant 0 : index
      %52 = vector.load %arg15[%c0_55, %c0_56, %c0_57] : memref<8x16x128xbf16, #tpu.memory_space<vmem>>, vector<8x16x128xbf16>
      tpu.vector_store %arg15[%c0_55, %c0_56, %c0_57], %51 {strides = array<i32>} : memref<8x16x128xbf16, #tpu.memory_space<vmem>>, vector<8x16x128xbf16>,
      %cst_58 = arith.constant 0.000000e+00 : bf16
      %53 = vector.broadcast %cst_58 : bf16 to vector<8x16x128xbf16>
      %c0_59 = arith.constant 0 : index
      %c0_60 = arith.constant 0 : index
      %c0_61 = arith.constant 0 : index
      %54 = vector.load %arg16[%c0_59, %c0_60, %c0_61] : memref<8x16x128xbf16, #tpu.memory_space<vmem>>, vector<8x16x128xbf16>
      tpu.vector_store %arg16[%c0_59, %c0_60, %c0_61], %53 {strides = array<i32>} : memref<8x16x128xbf16, #tpu.memory_space<vmem>>, vector<8x16x128xbf16>,
    } else {
    }
    %c0_i32_36 = arith.constant 0 : i32
    %c0_i32_37 = arith.constant 0 : i32
    %35 = arith.subi %3, %c0_i32_37 : i32
    %36 = arith.addi %c0_i32_37, %35 : i32
    %c1_i32 = arith.constant 1 : i32
    scf.for %arg21 = %c0_i32_37 to %36 step %c1_i32  : i32 {
      %c1_i32_54 = arith.constant 1 : i32
      %51 = arith.subi %3, %c1_i32_54 : i32
      %52 = arith.subi %51, %arg21 : i32
      %c0_55 = arith.constant 0 : index
      %c0_56 = arith.constant 0 : index
      %53 = vector.load %arg17[%c0_55, %c0_56] : memref<16x128xf32, #tpu.memory_space<vmem>>, vector<16x128xf32>
      %c0_57 = arith.constant 0 : index
      %c0_58 = arith.constant 0 : index
      %54 = vector.load %arg18[%c0_57, %c0_58] : memref<16x128xf32, #tpu.memory_space<vmem>>, vector<16x128xf32>
      %c0_59 = arith.constant 0 : index
      %c0_60 = arith.constant 0 : index
      %55 = vector.load %arg19[%c0_59, %c0_60] : memref<16x128xf32, #tpu.memory_space<vmem>>, vector<16x128xf32>
      %c0_61 = arith.constant 0 : index
      %c0_62 = arith.constant 0 : index
      %56 = vector.load %arg20[%c0_61, %c0_62] : memref<16x128xf32, #tpu.memory_space<vmem>>, vector<16x128xf32>
      %57 = arith.index_cast %arg21 : i32 to index
      %c0_63 = arith.constant 0 : index
      %c0_64 = arith.constant 0 : index
      %58 = vector.load %arg13[%57, %c0_63, %c0_64] : memref<8x16x512xbf16, #tpu.memory_space<vmem>>, vector<1x16x512xbf16>
      %59 = vector.shape_cast %58 : vector<1x16x512xbf16> to vector<16x512xbf16>
      %60 = arith.extf %59 : vector<16x512xbf16> to vector<16x512xf32>
      %61 = arith.truncf %53 : vector<16x128xf32> to vector<16x128xbf16>
      %cst_65 = arith.constant dense<0.000000e+00> : vector<16x512xf32>
      %62 = tpu.matmul %61, %22, %cst_65 {dimension_numbers = #tpu.dot_dimension_numbers<[1], [0], [0], [1], [0, 0, 1, 1], [], []>} : vector<16x128xbf16>, vector<128x512xbf16>, vector<16x512xf32> -> vector<16x512xf32>
      %63 = arith.addf %60, %62 : vector<16x512xf32>
      %64 = arith.index_cast %52 : i32 to index
      %c0_66 = arith.constant 0 : index
      %c0_67 = arith.constant 0 : index
      %65 = vector.load %arg14[%64, %c0_66, %c0_67] : memref<8x16x512xbf16, #tpu.memory_space<vmem>>, vector<1x16x512xbf16>
      %66 = vector.shape_cast %65 : vector<1x16x512xbf16> to vector<16x512xbf16>
      %67 = arith.extf %66 : vector<16x512xbf16> to vector<16x512xf32>
      %68 = arith.truncf %55 : vector<16x128xf32> to vector<16x128xbf16>
      %cst_68 = arith.constant dense<0.000000e+00> : vector<16x512xf32>
      %69 = tpu.matmul %68, %23, %cst_68 {dimension_numbers = #tpu.dot_dimension_numbers<[1], [0], [0], [1], [0, 0, 1, 1], [], []>} : vector<16x128xbf16>, vector<128x512xbf16>, vector<16x512xf32> -> vector<16x512xf32>
      %70 = arith.addf %67, %69 : vector<16x512xf32>
      %71 = vector.extract_strided_slice %63 {offsets = [0, 0], sizes = [16, 128], strides = [1, 1]} : vector<16x512xf32> to vector<16x128xf32>
      %cst_69 = arith.constant 5.000000e-01 : f32
      %72 = vector.broadcast %cst_69 : f32 to vector<16x128xf32>
      %73 = arith.mulf %72, %71 : vector<16x128xf32>
      %74 = math.tanh %73 : vector<16x128xf32>
      %cst_70 = arith.constant 5.000000e-01 : f32
      %75 = vector.broadcast %cst_70 : f32 to vector<16x128xf32>
      %76 = arith.mulf %75, %74 : vector<16x128xf32>
      %cst_71 = arith.constant 5.000000e-01 : f32
      %77 = vector.broadcast %cst_71 : f32 to vector<16x128xf32>
      %78 = arith.addf %76, %77 : vector<16x128xf32>
      %79 = vector.extract_strided_slice %63 {offsets = [0, 128], sizes = [16, 128], strides = [1, 1]} : vector<16x512xf32> to vector<16x128xf32>
      %cst_72 = arith.constant 5.000000e-01 : f32
      %80 = vector.broadcast %cst_72 : f32 to vector<16x128xf32>
      %81 = arith.mulf %80, %79 : vector<16x128xf32>
      %82 = math.tanh %81 : vector<16x128xf32>
      %cst_73 = arith.constant 5.000000e-01 : f32
      %83 = vector.broadcast %cst_73 : f32 to vector<16x128xf32>
      %84 = arith.mulf %83, %82 : vector<16x128xf32>
      %cst_74 = arith.constant 5.000000e-01 : f32
      %85 = vector.broadcast %cst_74 : f32 to vector<16x128xf32>
      %86 = arith.addf %84, %85 : vector<16x128xf32>
      %87 = vector.extract_strided_slice %63 {offsets = [0, 256], sizes = [16, 128], strides = [1, 1]} : vector<16x512xf32> to vector<16x128xf32>
      %88 = math.tanh %87 : vector<16x128xf32>
      %89 = vector.extract_strided_slice %63 {offsets = [0, 384], sizes = [16, 128], strides = [1, 1]} : vector<16x512xf32> to vector<16x128xf32>
      %cst_75 = arith.constant 5.000000e-01 : f32
      %90 = vector.broadcast %cst_75 : f32 to vector<16x128xf32>
      %91 = arith.mulf %90, %89 : vector<16x128xf32>
      %92 = math.tanh %91 : vector<16x128xf32>
      %cst_76 = arith.constant 5.000000e-01 : f32
      %93 = vector.broadcast %cst_76 : f32 to vector<16x128xf32>
      %94 = arith.mulf %93, %92 : vector<16x128xf32>
      %cst_77 = arith.constant 5.000000e-01 : f32
      %95 = vector.broadcast %cst_77 : f32 to vector<16x128xf32>
      %96 = arith.addf %94, %95 : vector<16x128xf32>
      %97 = arith.mulf %86, %54 : vector<16x128xf32>
      %98 = arith.mulf %78, %88 : vector<16x128xf32>
      %99 = arith.addf %97, %98 : vector<16x128xf32>
      %100 = math.tanh %99 : vector<16x128xf32>
      %101 = arith.mulf %96, %100 : vector<16x128xf32>
      %102 = vector.extract_strided_slice %70 {offsets = [0, 0], sizes = [16, 128], strides = [1, 1]} : vector<16x512xf32> to vector<16x128xf32>
      %cst_78 = arith.constant 5.000000e-01 : f32
      %103 = vector.broadcast %cst_78 : f32 to vector<16x128xf32>
      %104 = arith.mulf %103, %102 : vector<16x128xf32>
      %105 = math.tanh %104 : vector<16x128xf32>
      %cst_79 = arith.constant 5.000000e-01 : f32
      %106 = vector.broadcast %cst_79 : f32 to vector<16x128xf32>
      %107 = arith.mulf %106, %105 : vector<16x128xf32>
      %cst_80 = arith.constant 5.000000e-01 : f32
      %108 = vector.broadcast %cst_80 : f32 to vector<16x128xf32>
      %109 = arith.addf %107, %108 : vector<16x128xf32>
      %110 = vector.extract_strided_slice %70 {offsets = [0, 128], sizes = [16, 128], strides = [1, 1]} : vector<16x512xf32> to vector<16x128xf32>
      %cst_81 = arith.constant 5.000000e-01 : f32
      %111 = vector.broadcast %cst_81 : f32 to vector<16x128xf32>
      %112 = arith.mulf %111, %110 : vector<16x128xf32>
      %113 = math.tanh %112 : vector<16x128xf32>
      %cst_82 = arith.constant 5.000000e-01 : f32
      %114 = vector.broadcast %cst_82 : f32 to vector<16x128xf32>
      %115 = arith.mulf %114, %113 : vector<16x128xf32>
      %cst_83 = arith.constant 5.000000e-01 : f32
      %116 = vector.broadcast %cst_83 : f32 to vector<16x128xf32>
      %117 = arith.addf %115, %116 : vector<16x128xf32>
      %118 = vector.extract_strided_slice %70 {offsets = [0, 256], sizes = [16, 128], strides = [1, 1]} : vector<16x512xf32> to vector<16x128xf32>
      %119 = math.tanh %118 : vector<16x128xf32>
      %120 = vector.extract_strided_slice %70 {offsets = [0, 384], sizes = [16, 128], strides = [1, 1]} : vector<16x512xf32> to vector<16x128xf32>
      %cst_84 = arith.constant 5.000000e-01 : f32
      %121 = vector.broadcast %cst_84 : f32 to vector<16x128xf32>
      %122 = arith.mulf %121, %120 : vector<16x128xf32>
      %123 = math.tanh %122 : vector<16x128xf32>
      %cst_85 = arith.constant 5.000000e-01 : f32
      %124 = vector.broadcast %cst_85 : f32 to vector<16x128xf32>
      %125 = arith.mulf %124, %123 : vector<16x128xf32>
      %cst_86 = arith.constant 5.000000e-01 : f32
      %126 = vector.broadcast %cst_86 : f32 to vector<16x128xf32>
      %127 = arith.addf %125, %126 : vector<16x128xf32>
      %128 = arith.mulf %117, %56 : vector<16x128xf32>
      %129 = arith.mulf %109, %119 : vector<16x128xf32>
      %130 = arith.addf %128, %129 : vector<16x128xf32>
      %131 = math.tanh %130 : vector<16x128xf32>
      %132 = arith.mulf %127, %131 : vector<16x128xf32>
      %133 = vector.broadcast %arg21 : i32 to vector<16x1xi32>
      %134 = arith.cmpi slt, %133, %0 : vector<16x1xi32>
      %135 = vector.broadcast %52 : i32 to vector<16x1xi32>
      %136 = arith.cmpi slt, %135, %0 : vector<16x1xi32>
      %137 = vector.shape_cast %134 : vector<16x1xi1> to vector<16x1xi1>
      %138 = vector.broadcast %137 : vector<16x1xi1> to vector<16x128xi1>
      %139 = arith.select %138, %101, %53 : vector<16x128xi1>, vector<16x128xf32>
      %c0_87 = arith.constant 0 : index
      %c0_88 = arith.constant 0 : index
      %140 = vector.load %arg17[%c0_87, %c0_88] : memref<16x128xf32, #tpu.memory_space<vmem>>, vector<16x128xf32>
      tpu.vector_store %arg17[%c0_87, %c0_88], %139 {strides = array<i32>} : memref<16x128xf32, #tpu.memory_space<vmem>>, vector<16x128xf32>,
      %141 = vector.shape_cast %134 : vector<16x1xi1> to vector<16x1xi1>
      %142 = vector.broadcast %141 : vector<16x1xi1> to vector<16x128xi1>
      %143 = arith.select %142, %99, %54 : vector<16x128xi1>, vector<16x128xf32>
      %c0_89 = arith.constant 0 : index
      %c0_90 = arith.constant 0 : index
      %144 = vector.load %arg18[%c0_89, %c0_90] : memref<16x128xf32, #tpu.memory_space<vmem>>, vector<16x128xf32>
      tpu.vector_store %arg18[%c0_89, %c0_90], %143 {strides = array<i32>} : memref<16x128xf32, #tpu.memory_space<vmem>>, vector<16x128xf32>,
      %145 = vector.shape_cast %136 : vector<16x1xi1> to vector<16x1xi1>
      %146 = vector.broadcast %145 : vector<16x1xi1> to vector<16x128xi1>
      %147 = arith.select %146, %132, %55 : vector<16x128xi1>, vector<16x128xf32>
      %c0_91 = arith.constant 0 : index
      %c0_92 = arith.constant 0 : index
      %148 = vector.load %arg19[%c0_91, %c0_92] : memref<16x128xf32, #tpu.memory_space<vmem>>, vector<16x128xf32>
      tpu.vector_store %arg19[%c0_91, %c0_92], %147 {strides = array<i32>} : memref<16x128xf32, #tpu.memory_space<vmem>>, vector<16x128xf32>,
      %149 = vector.shape_cast %136 : vector<16x1xi1> to vector<16x1xi1>
      %150 = vector.broadcast %149 : vector<16x1xi1> to vector<16x128xi1>
      %151 = arith.select %150, %130, %56 : vector<16x128xi1>, vector<16x128xf32>
      %c0_93 = arith.constant 0 : index
      %c0_94 = arith.constant 0 : index
      %152 = vector.load %arg20[%c0_93, %c0_94] : memref<16x128xf32, #tpu.memory_space<vmem>>, vector<16x128xf32>
      tpu.vector_store %arg20[%c0_93, %c0_94], %151 {strides = array<i32>} : memref<16x128xf32, #tpu.memory_space<vmem>>, vector<16x128xf32>,
      %cst_95 = arith.constant 0.000000e+00 : f32
      %153 = vector.shape_cast %134 : vector<16x1xi1> to vector<16x1xi1>
      %154 = vector.broadcast %153 : vector<16x1xi1> to vector<16x128xi1>
      %155 = vector.broadcast %cst_95 : f32 to vector<16x128xf32>
      %156 = arith.select %154, %101, %155 : vector<16x128xi1>, vector<16x128xf32>
      %157 = arith.truncf %156 : vector<16x128xf32> to vector<16x128xbf16>
      %158 = arith.index_cast %arg21 : i32 to index
      %c0_96 = arith.constant 0 : index
      %c0_97 = arith.constant 0 : index
      %159 = vector.load %arg15[%158, %c0_96, %c0_97] : memref<8x16x128xbf16, #tpu.memory_space<vmem>>, vector<1x16x128xbf16>
      %160 = vector.shape_cast %159 : vector<1x16x128xbf16> to vector<16x128xbf16>
      %161 = vector.shape_cast %157 : vector<16x128xbf16> to vector<1x16x128xbf16>
      tpu.vector_store %arg15[%158, %c0_96, %c0_97], %161 {strides = array<i32>} : memref<8x16x128xbf16, #tpu.memory_space<vmem>>, vector<1x16x128xbf16>,
      %cst_98 = arith.constant 0.000000e+00 : f32
      %162 = vector.shape_cast %136 : vector<16x1xi1> to vector<16x1xi1>
      %163 = vector.broadcast %162 : vector<16x1xi1> to vector<16x128xi1>
      %164 = vector.broadcast %cst_98 : f32 to vector<16x128xf32>
      %165 = arith.select %163, %132, %164 : vector<16x128xi1>, vector<16x128xf32>
      %166 = arith.truncf %165 : vector<16x128xf32> to vector<16x128xbf16>
      %167 = arith.index_cast %52 : i32 to index
      %c0_99 = arith.constant 0 : index
      %c0_100 = arith.constant 0 : index
      %168 = vector.load %arg16[%167, %c0_99, %c0_100] : memref<8x16x128xbf16, #tpu.memory_space<vmem>>, vector<1x16x128xbf16>
      %169 = vector.shape_cast %168 : vector<1x16x128xbf16> to vector<16x128xbf16>
      %170 = vector.shape_cast %166 : vector<16x128xbf16> to vector<1x16x128xbf16>
      tpu.vector_store %arg16[%167, %c0_99, %c0_100], %170 {strides = array<i32>} : memref<8x16x128xbf16, #tpu.memory_space<vmem>>, vector<1x16x128xbf16>,
    }
    %c0_38 = arith.constant 0 : index
    %c0_39 = arith.constant 0 : index
    %c0_40 = arith.constant 0 : index
    %37 = vector.load %arg15[%c0_38, %c0_39, %c0_40] : memref<8x16x128xbf16, #tpu.memory_space<vmem>>, vector<8x16x128xbf16>
    %38 = vector.shape_cast %37 : vector<8x16x128xbf16> to vector<128x128xbf16>
    %c0_41 = arith.constant 0 : index
    %c0_42 = arith.constant 0 : index
    %c0_43 = arith.constant 0 : index
    %39 = vector.load %arg16[%c0_41, %c0_42, %c0_43] : memref<8x16x128xbf16, #tpu.memory_space<vmem>>, vector<8x16x128xbf16>
    %40 = vector.shape_cast %39 : vector<8x16x128xbf16> to vector<128x128xbf16>
    %c0_44 = arith.constant 0 : index
    %c0_45 = arith.constant 0 : index
    %41 = vector.load %arg10[%c0_44, %c0_45] : memref<256x128xbf16, #tpu.memory_space<vmem>>, vector<128x128xbf16>
    %cst_46 = arith.constant dense<0.000000e+00> : vector<128x128xf32>
    %42 = tpu.matmul %38, %41, %cst_46 {dimension_numbers = #tpu.dot_dimension_numbers<[1], [0], [0], [1], [0, 0, 1, 1], [], []>} : vector<128x128xbf16>, vector<128x128xbf16>, vector<128x128xf32> -> vector<128x128xf32>
    %c128 = arith.constant 128 : index
    %c0_47 = arith.constant 0 : index
    %43 = vector.load %arg10[%c128, %c0_47] : memref<256x128xbf16, #tpu.memory_space<vmem>>, vector<128x128xbf16>
    %cst_48 = arith.constant dense<0.000000e+00> : vector<128x128xf32>
    %44 = tpu.matmul %40, %43, %cst_48 {dimension_numbers = #tpu.dot_dimension_numbers<[1], [0], [0], [1], [0, 0, 1, 1], [], []>} : vector<128x128xbf16>, vector<128x128xbf16>, vector<128x128xf32> -> vector<128x128xf32>
    %45 = arith.addf %42, %44 : vector<128x128xf32>
    %c0_49 = arith.constant 0 : index
    %c0_50 = arith.constant 0 : index
    %46 = vector.load %arg11[%c0_49, %c0_50] : memref<1x128xf32, #tpu.memory_space<vmem>>, vector<1x128xf32>
    %47 = vector.broadcast %46 : vector<1x128xf32> to vector<128x128xf32>
    %48 = arith.addf %45, %47 : vector<128x128xf32>
    %49 = vector.shape_cast %48 : vector<128x128xf32> to vector<8x16x128xf32>
    %c0_51 = arith.constant 0 : index
    %c0_52 = arith.constant 0 : index
    %c0_53 = arith.constant 0 : index
    %50 = vector.load %arg12[%c0_51, %c0_52, %c0_53] : memref<8x16x128xf32, #tpu.memory_space<vmem>>, vector<8x16x128xf32>
    tpu.vector_store %arg12[%c0_51, %c0_52, %c0_53], %49 {strides = array<i32>} : memref<8x16x128xf32, #tpu.memory_space<vmem>>, vector<8x16x128xf32>,
    return
  }
  func.func @transform_0(%arg0: i32, %arg1: memref<1xi32, #tpu.memory_space<smem>>) -> (i32, i32) {
    %c0_i32 = arith.constant 0 : i32
    %c0_i32_0 = arith.constant 0 : i32
    return %arg0, %c0_i32 : i32, i32
  }
  func.func @transform_1(%arg0: i32, %arg1: memref<1xi32, #tpu.memory_space<smem>>) -> (i32, i32, i32) {
    %c0_i32 = arith.constant 0 : i32
    %c0_i32_0 = arith.constant 0 : i32
    %c0_i32_1 = arith.constant 0 : i32
    return %c0_i32, %arg0, %c0_i32_0 : i32, i32, i32
  }
  func.func @transform_2(%arg0: i32, %arg1: memref<1xi32, #tpu.memory_space<smem>>) -> (i32, i32) {
    %c0_i32 = arith.constant 0 : i32
    %c0_i32_0 = arith.constant 0 : i32
    %c0_i32_1 = arith.constant 0 : i32
    return %c0_i32, %c0_i32_0 : i32, i32
  }
  func.func @transform_3(%arg0: i32, %arg1: memref<1xi32, #tpu.memory_space<smem>>) -> (i32, i32) {
    %c0_i32 = arith.constant 0 : i32
    %c0_i32_0 = arith.constant 0 : i32
    %c0_i32_1 = arith.constant 0 : i32
    return %c0_i32, %c0_i32_0 : i32, i32
  }
  func.func @transform_4(%arg0: i32, %arg1: memref<1xi32, #tpu.memory_space<smem>>) -> (i32, i32) {
    %c0_i32 = arith.constant 0 : i32
    %c0_i32_0 = arith.constant 0 : i32
    %c0_i32_1 = arith.constant 0 : i32
    return %c0_i32, %c0_i32_0 : i32, i32
  }
  func.func @transform_5(%arg0: i32, %arg1: memref<1xi32, #tpu.memory_space<smem>>) -> (i32, i32) {
    %c0_i32 = arith.constant 0 : i32
    %c0_i32_0 = arith.constant 0 : i32
    %c0_i32_1 = arith.constant 0 : i32
    return %c0_i32, %c0_i32_0 : i32, i32
  }
  func.func @transform_6(%arg0: i32, %arg1: memref<1xi32, #tpu.memory_space<smem>>) -> (i32, i32) {
    %c0_i32 = arith.constant 0 : i32
    %c0_i32_0 = arith.constant 0 : i32
    %c0_i32_1 = arith.constant 0 : i32
    return %c0_i32, %c0_i32_0 : i32, i32
  }
  func.func @transform_7(%arg0: i32, %arg1: memref<1xi32, #tpu.memory_space<smem>>) -> (i32, i32) {
    %c0_i32 = arith.constant 0 : i32
    %c0_i32_0 = arith.constant 0 : i32
    %c0_i32_1 = arith.constant 0 : i32
    return %c0_i32, %c0_i32_0 : i32, i32
  }
  func.func @transform_8(%arg0: i32, %arg1: memref<1xi32, #tpu.memory_space<smem>>) -> (i32, i32) {
    %c0_i32 = arith.constant 0 : i32
    %c0_i32_0 = arith.constant 0 : i32
    %c0_i32_1 = arith.constant 0 : i32
    return %c0_i32, %c0_i32_0 : i32, i32
  }
  func.func @transform_9(%arg0: i32, %arg1: memref<1xi32, #tpu.memory_space<smem>>) -> (i32, i32) {
    %c0_i32 = arith.constant 0 : i32
    %c0_i32_0 = arith.constant 0 : i32
    %c0_i32_1 = arith.constant 0 : i32
    return %c0_i32, %c0_i32_0 : i32, i32
  }
  func.func @transform_10(%arg0: i32, %arg1: memref<1xi32, #tpu.memory_space<smem>>) -> (i32, i32, i32) {
    %c0_i32 = arith.constant 0 : i32
    %c0_i32_0 = arith.constant 0 : i32
    %c0_i32_1 = arith.constant 0 : i32
    return %c0_i32, %arg0, %c0_i32_0 : i32, i32, i32
  }
}

</mosaic_0001>

<bundles_post_ra>
// kernel: tpu_custom_call.1
= control target key start
LH: loop header
LB: loop body
LE: loop exit
PB: predicated region body
PF: predicated region fallthrough
CT: control target
= control target key end

     0   :  { %17 = vsyncpa [#allocation13], 0  ;;  %s3992_s0 = inlined_call_operand.<no memory space> [shape: s32[1], index: 0, kind: input, shape index: {}]   ;;  %s3993_s1 = inlined_call_operand.hbm [shape: s32[16,1], index: 1, kind: input, shape index: {}]   ;;  %s3994_s2 = inlined_call_operand.hbm [shape: bf16[8,16,128], index: 2, kind: input, shape index: {}]   ;;  %s3995_s3 = inlined_call_operand.hbm [shape: bf16[128,512], index: 3, kind: input, shape index: {}]   ;;  %s3996_s4 = inlined_call_operand.hbm [shape: bf16[128,512], index: 4, kind: input, shape index: {}]   ;;  %s3997_s5 = inlined_call_operand.hbm [shape: f32[1,512], index: 5, kind: input, shape index: {}]   ;;  %s3998_s6 = inlined_call_operand.hbm [shape: bf16[128,512], index: 6, kind: input, shape index: {}]   ;;  %s3999_s7 = inlined_call_operand.hbm [shape: bf16[128,512], index: 7, kind: input, shape index: {}]   ;;  %s4000_s8 = inlined_call_operand.hbm [shape: f32[1,512], index: 8, kind: input, shape index: {}]   ;;  %s4001_s9 = inlined_call_operand.hbm [shape: bf16[256,128], index: 9, kind: input, shape index: {}]   ;;  %s4002_s10 = inlined_call_operand.hbm [shape: f32[1,128], index: 10, kind: input, shape index: {}]   ;;  %s4003_s11 = inlined_call_operand.hbm [shape: f32[8,16,128], index: 11, kind: output, shape index: {}]  }
   0x1   :  { %18 = vsyncpa [#allocation16], 0 }
   0x2   :  { %19 = vsyncpa [#allocation19], 0 }
   0x3   :  { %20 = vsyncpa [#allocation22], 0 }
   0x4   :  { %21 = vsyncpa [#allocation25], 0 }
   0x5   :  { %22 = vsyncpa [#allocation28], 0 }
   0x6   :  { %23 = vsyncpa [#allocation14], 0  ;;  %s3169_s17 = smov [#allocation15]   ;;  %s2905_s21 = scalar_lea.hbm %s3994_s2, 1024 }
   0x7   :  { %s41_s18 = sshll.u32 %s3169_s17, 4  ;;  %p2906_p0 = scmp.ne.s32.totalorder %s3994_s2, %s2905_s21  ;;  %s42_s18 = int_to_ptr.vmem [resolvable:$true] %s41_s18 }
   0x8   :  { %p2909_p1 = scmp.lt.u32.totalorder %s2905_s21, %s3994_s2 }
   0xa   :  { %p2911_p2 = pnand %p2909_p1, %p2906_p0 }
   0xc   :  { %2914 = shalt.err (!%p2911_p2)
}
   0xd   :  { %s2915_s26 = scalar_lea.vmem %s42_s18, 1024  ;;  %p2920_p4 = scmp.lt.s32.totalorder %s42_s18, %s42_s18 }
   0xe   :  { %p2916_p3 = scmp.ne.s32.totalorder %s42_s18, %s2915_s26  ;;  %p2921_p5 = scmp.lt.s32.totalorder %s2915_s26, %s2915_s26 }
  0x10   :  { %p2922_p6 = por %p2921_p5, %p2920_p4 }
  0x12   :  { %p2923_p7 = pnand %p2922_p6, %p2916_p3 }
  0x14   :  { %2926 = shalt.err (!%p2923_p7)
}
  0x15   :  { %s3170_s27 = smov 64   ;;  %s3171_s28 = smov 4  }
  0x16   :  { %47 = dma.hbm_to_vmem [thread:$0]  %s3994_s2, 1024, %s42_s18, [#allocation16], %s3170_s27, %s3170_s27, %s3171_s28  }
  0x17   :  { %s3172_s12 = smov [#allocation18]   ;;  %s3173_s14 = smov [#allocation21]  }
  0x18   :  { %s65_s13 = sshll.u32 %s3172_s12, 4  ;;  %s87_s15 = sshll.u32 %s3173_s14, 4  ;;  %s66_s13 = int_to_ptr.vmem [resolvable:$true] %s65_s13  ;;  %s88_s15 = int_to_ptr.vmem [resolvable:$true] %s87_s15 }
  0x19   :  { %s2927_s19 = scalar_lea.hbm %s3996_s4, 4096 }
  0x1a   :  { %p2928_p8 = scmp.ne.s32.totalorder %s3996_s4, %s2927_s19  ;;  %p2931_p9 = scmp.lt.u32.totalorder %s2927_s19, %s3996_s4 }
  0x1c   :  { %p2933_p10 = pnand %p2931_p9, %p2928_p8 }
  0x1e   :  { %2936 = shalt.err (!%p2933_p10)
}
  0x1f   :  { %s2937_s2 = scalar_lea.vmem %s66_s13, 4096  ;;  %p2942_p12 = scmp.lt.s32.totalorder %s66_s13, %s66_s13 }
  0x20   :  { %p2938_p11 = scmp.ne.s32.totalorder %s66_s13, %s2937_s2  ;;  %p2943_p13 = scmp.lt.s32.totalorder %s2937_s2, %s2937_s2 }
  0x22   :  { %p2944_p0 = por %p2943_p13, %p2942_p12 }
  0x24   :  { %p2945_p1 = pnand %p2944_p0, %p2938_p11 }
  0x26   :  { %2948 = shalt.err (!%p2945_p1)
}
  0x27   :  { %s3174_s18 = smov 256   ;;  %s3175_s24 = smov 16  }
  0x28   :  { %71 = dma.hbm_to_vmem [thread:$0]  %s3996_s4, 4096, %s66_s13, [#allocation19], %s3174_s18, %s3174_s18, %s3175_s24  }
  0x29   :  { %s2949_s12 = scalar_lea.hbm %s3998_s6, 4096 }
  0x2a   :  { %p2950_p2 = scmp.ne.s32.totalorder %s3998_s6, %s2949_s12  ;;  %p2953_p3 = scmp.lt.u32.totalorder %s2949_s12, %s3998_s6 }
  0x2c   :  { %p2955_p4 = pnand %p2953_p3, %p2950_p2 }
  0x2e   :  { %2958 = shalt.err (!%p2955_p4)
}
  0x2f   :  { %s2959_s20 = scalar_lea.vmem %s88_s15, 4096  ;;  %p2964_p6 = scmp.lt.s32.totalorder %s88_s15, %s88_s15 }
  0x30   :  { %p2960_p5 = scmp.ne.s32.totalorder %s88_s15, %s2959_s20  ;;  %p2965_p7 = scmp.lt.s32.totalorder %s2959_s20, %s2959_s20 }
  0x32   :  { %p2966_p8 = por %p2965_p7, %p2964_p6 }
  0x34   :  { %p2967_p9 = pnand %p2966_p8, %p2960_p5 }
  0x36   :  { %2970 = shalt.err (!%p2967_p9)
}
  0x37   :  { %93 = dma.hbm_to_vmem [thread:$0]  %s3998_s6, 4096, %s88_s15, [#allocation22], %s3174_s18, %s3174_s18, %s3175_s24  }
  0x38   :  { %s3176_s21 = smov [#allocation24]   ;;  %s3177_s23 = smov [#allocation12]  }
  0x39   :  { %s112_s22 = sshll.u32 %s3176_s21, 4  ;;  %s29_s2 = sshll.u32 %s3177_s23, 4  ;;  %s113_s22 = int_to_ptr.vmem [resolvable:$true] %s112_s22  ;;  %s30_s2 = int_to_ptr.vmem [resolvable:$true] %s29_s2 }
  0x3a   :  { %s2971_s29 = scalar_lea.hbm %s4000_s8, 64 }
  0x3b   :  { %p2972_p10 = scmp.ne.s32.totalorder %s4000_s8, %s2971_s29  ;;  %p2975_p11 = scmp.lt.u32.totalorder %s2971_s29, %s4000_s8 }
  0x3d   :  { %p2977_p12 = pnand %p2975_p11, %p2972_p10 }
  0x3f   :  { %2980 = shalt.err (!%p2977_p12)
}
  0x40   :  { %s2981_s6 = scalar_lea.vmem %s113_s22, 64  ;;  %p2986_p0 = scmp.lt.s32.totalorder %s113_s22, %s113_s22 }
  0x41   :  { %p2982_p13 = scmp.ne.s32.totalorder %s113_s22, %s2981_s6  ;;  %p2987_p1 = scmp.lt.s32.totalorder %s2981_s6, %s2981_s6 }
  0x43   :  { %p2988_p2 = por %p2987_p1, %p2986_p0 }
  0x45   :  { %p2989_p3 = pnand %p2988_p2, %p2982_p13 }
  0x47   :  { %2992 = shalt.err (!%p2989_p3)
}
  0x48   :  { %115 = dma.hbm_to_vmem [thread:$0]  %s4000_s8, 64, %s113_s22, [#allocation25]  }
  0x49   :  { %s2993_s4 = scalar_lea.hbm %s3993_s1, 256 }
  0x4a   :  { %p2994_p4 = scmp.ne.s32.totalorder %s3993_s1, %s2993_s4  ;;  %p2997_p5 = scmp.lt.u32.totalorder %s2993_s4, %s3993_s1 }
  0x4c   :  { %p2999_p6 = pnand %p2997_p5, %p2994_p4 }
  0x4e   :  { %3002 = shalt.err (!%p2999_p6)
}
  0x4f   :  { %s3003_s26 = scalar_lea.vmem %s30_s2, 256  ;;  %p3008_p8 = scmp.lt.s32.totalorder %s30_s2, %s30_s2 }
  0x50   :  { %p3004_p7 = scmp.ne.s32.totalorder %s30_s2, %s3003_s26  ;;  %p3009_p9 = scmp.lt.s32.totalorder %s3003_s26, %s3003_s26 }
  0x52   :  { %p3010_p10 = por %p3009_p9, %p3008_p8 }
  0x54   :  { %p3011_p11 = pnand %p3010_p10, %p3004_p7 }
  0x56   :  { %3014 = shalt.err (!%p3011_p11)
}
  0x57   :  { %s3178_s8 = smov 128   ;;  %s3179_s22 = smov 8  }
  0x58   :  { %35 = dma.hbm_to_vmem [thread:$0]  %s3993_s1, 256, %s30_s2, [#allocation13], %s3178_s8, %s3178_s8, %s3179_s22  }
  0x59   :  { %s3180_s12 = smov [#allocation17]   ;;  %s3181_s16 = smov [#allocation20]  }
  0x5a   :  { %s53_s14 = sshll.u32 %s3180_s12, 4  ;;  %s78_s6 = sshll.u32 %s3181_s16, 4  ;;  %s54_s14 = int_to_ptr.vmem [resolvable:$true] %s53_s14  ;;  %s79_s6 = int_to_ptr.vmem [resolvable:$true] %s78_s6 }
  0x5b   :  { %s3015_s19 = scalar_lea.hbm %s3995_s3, 4096 }
  0x5c   :  { %p3016_p12 = scmp.ne.s32.totalorder %s3995_s3, %s3015_s19  ;;  %p3019_p13 = scmp.lt.u32.totalorder %s3015_s19, %s3995_s3 }
  0x5e   :  { %p3021_p0 = pnand %p3019_p13, %p3016_p12 }
  0x60   :  { %3024 = shalt.err (!%p3021_p0)
}
  0x61   :  { %s3025_s1 = scalar_lea.vmem %s54_s14, 4096  ;;  %p3030_p2 = scmp.lt.s32.totalorder %s54_s14, %s54_s14 }
  0x62   :  { %p3026_p1 = scmp.ne.s32.totalorder %s54_s14, %s3025_s1  ;;  %p3031_p3 = scmp.lt.s32.totalorder %s3025_s1, %s3025_s1 }
  0x64   :  { %p3032_p4 = por %p3031_p3, %p3030_p2 }
  0x66   :  { %p3033_p5 = pnand %p3032_p4, %p3026_p1 }
  0x68   :  { %3036 = shalt.err (!%p3033_p5)
}
  0x69   :  { %59 = dma.hbm_to_vmem [thread:$0]  %s3995_s3, 4096, %s54_s14, [#allocation16], %s3174_s18, %s3174_s18, %s3175_s24  }
  0x6a   :  { %s3037_s29 = scalar_lea.hbm %s3997_s5, 64 }
  0x6b   :  { %p3038_p6 = scmp.ne.s32.totalorder %s3997_s5, %s3037_s29  ;;  %p3041_p7 = scmp.lt.u32.totalorder %s3037_s29, %s3997_s5 }
  0x6d   :  { %p3043_p8 = pnand %p3041_p7, %p3038_p6 }
  0x6f   :  { %3046 = shalt.err (!%p3043_p8)
}
  0x70   :  { %s3047_s17 = scalar_lea.vmem %s79_s6, 64  ;;  %p3052_p10 = scmp.lt.s32.totalorder %s79_s6, %s79_s6 }
  0x71   :  { %p3048_p9 = scmp.ne.s32.totalorder %s79_s6, %s3047_s17  ;;  %p3053_p11 = scmp.lt.s32.totalorder %s3047_s17, %s3047_s17 }
  0x73   :  { %p3054_p12 = por %p3053_p11, %p3052_p10 }
  0x75   :  { %p3055_p13 = pnand %p3054_p12, %p3048_p9 }
  0x77   :  { %3058 = shalt.err (!%p3055_p13)
}
  0x78   :  { %81 = dma.hbm_to_vmem [thread:$0]  %s3997_s5, 64, %s79_s6, [#allocation19]  }
  0x79   :  { %s3182_s19 = smov [#allocation23]   ;;  %s3183_s4 = smov [#allocation26]  }
  0x7a   :  { %s99_s20 = sshll.u32 %s3182_s19, 4  ;;  %s121_s13 = sshll.u32 %s3183_s4, 4  ;;  %s100_s20 = int_to_ptr.vmem [resolvable:$true] %s99_s20  ;;  %s122_s13 = int_to_ptr.vmem [resolvable:$true] %s121_s13 }
  0x7b   :  { %s3059_s2 = scalar_lea.hbm %s3999_s7, 4096 }
  0x7c   :  { %p3060_p0 = scmp.ne.s32.totalorder %s3999_s7, %s3059_s2  ;;  %p3063_p1 = scmp.lt.u32.totalorder %s3059_s2, %s3999_s7 }
  0x7e   :  { %p3065_p2 = pnand %p3063_p1, %p3060_p0 }
  0x80   :  { %3068 = shalt.err (!%p3065_p2)
}
  0x81   :  { %s3069_s5 = scalar_lea.vmem %s100_s20, 4096  ;;  %p3074_p4 = scmp.lt.s32.totalorder %s100_s20, %s100_s20 }
  0x82   :  { %p3070_p3 = scmp.ne.s32.totalorder %s100_s20, %s3069_s5  ;;  %p3075_p5 = scmp.lt.s32.totalorder %s3069_s5, %s3069_s5 }
  0x84   :  { %p3076_p6 = por %p3075_p5, %p3074_p4 }
  0x86   :  { %p3077_p7 = pnand %p3076_p6, %p3070_p3 }
  0x88   :  { %3080 = shalt.err (!%p3077_p7)
}
  0x89   :  { %105 = dma.hbm_to_vmem [thread:$0]  %s3999_s7, 4096, %s100_s20, [#allocation22], %s3174_s18, %s3174_s18, %s3175_s24  }
  0x8a   :  { %s3081_s15 = scalar_lea.hbm %s4001_s9, 2048 }
  0x8b   :  { %p3082_p8 = scmp.ne.s32.totalorder %s4001_s9, %s3081_s15  ;;  %p3085_p9 = scmp.lt.u32.totalorder %s3081_s15, %s4001_s9 }
  0x8d   :  { %p3087_p10 = pnand %p3085_p9, %p3082_p8 }
  0x8f   :  { %3090 = shalt.err (!%p3087_p10)
}
  0x90   :  { %s3091_s4 = scalar_lea.vmem %s122_s13, 2048  ;;  %p3096_p12 = scmp.lt.s32.totalorder %s122_s13, %s122_s13 }
  0x91   :  { %p3092_p11 = scmp.ne.s32.totalorder %s122_s13, %s3091_s4  ;;  %p3097_p13 = scmp.lt.s32.totalorder %s3091_s4, %s3091_s4 }
  0x93   :  { %p3098_p0 = por %p3097_p13, %p3096_p12 }
  0x95   :  { %p3099_p1 = pnand %p3098_p0, %p3092_p11 }
  0x97   :  { %3102 = shalt.err (!%p3099_p1)
}
  0x98   :  { %127 = dma.hbm_to_vmem [thread:$0]  %s4001_s9, 2048, %s122_s13, [#allocation25], %s3170_s27, %s3170_s27, %s3171_s28  }
  0x99   :  { %s3184_s24 = smov [#allocation27]   ;;  %s3103_s2 = scalar_lea.hbm %s4002_s10, 16 }
  0x9a   :  { %s134_s20 = sshll.u32 %s3184_s24, 4  ;;  %p3104_p2 = scmp.ne.s32.totalorder %s4002_s10, %s3103_s2  ;;  %s135_s20 = int_to_ptr.vmem [resolvable:$true] %s134_s20 }
  0x9b   :  { %p3107_p3 = scmp.lt.u32.totalorder %s3103_s2, %s4002_s10 }
  0x9d   :  { %p3109_p4 = pnand %p3107_p3, %p3104_p2 }
  0x9f   :  { %3112 = shalt.err (!%p3109_p4)
}
  0xa0   :  { %s3113_s5 = scalar_lea.vmem %s135_s20, 16  ;;  %s3117_s9 = scalar_lea.vmem %s135_s20, 32 }
  0xa1   :  { %p3114_p5 = scmp.ne.s32.totalorder %s135_s20, %s3113_s5  ;;  %p3118_p6 = scmp.lt.s32.totalorder %s135_s20, %s135_s20 }
  0xa2   :  { %p3119_p7 = scmp.lt.s32.totalorder %s3117_s9, %s3113_s5 }
  0xa4   :  { %p3120_p8 = por %p3119_p7, %p3118_p6 }
  0xa6   :  { %p3121_p9 = pnand %p3120_p8, %p3114_p5 }
  0xa8   :  { %3124 = shalt.err (!%p3121_p9)
}
  0xa9   :  { %137 = dma.hbm_to_vmem [thread:$0]  %s4002_s10, 16, %s135_s20, [#allocation28]  }
  0xaa   :  { %3151 = dma.done.wait [#allocation13], 256  }
  0xab   :  { %3152 = vsyncadd [#allocation13], 4294967040 }
  0xac   :  { %3153 = dma.done.wait [#allocation16], 5120  }
  0xad   :  { %3154 = vsyncadd [#allocation16], 4294962176 }
  0xae   :  { %3155 = dma.done.wait [#allocation19], 4160  }
  0xaf   :  { %3156 = vsyncadd [#allocation19], 4294963136 }
  0xb0   :  { %3157 = dma.done.wait [#allocation22], 8192  }
  0xb1   :  { %3158 = vsyncadd [#allocation22], 4294959104 }
  0xb2   :  { %3159 = dma.done.wait [#allocation25], 2112  }
  0xb3   :  { %3160 = vsyncadd [#allocation25], 4294965184 }
  0xb4   :  { %3161 = dma.done.wait [#allocation28], 16  }
  0xb5   :  { %3162 = vsyncadd [#allocation28], 4294967280  ;;  %p172_p10 = scmp.lt.s32.totalorder %s3992_s0, 8  ;;  %v3185_v0 = vmov 0.0   ;;  %v4004_v1 = vmov 0   ;;  %v3405_v2 = vld [vmem:[#allocation12] sm:$0xff] }
  0xb6   :  { %1310 = vst [vmem:[#allocation6] sm:$0xff] %v3185_v0  ;;  %1311 = vst [vmem:[#allocation6 + $0x8] sm:$0xff] %v3185_v0  ;;  %484 = vmatprep.mubr.bf16.mxu0 %v4004_v1  ;;  %597 = vmatprep.mubr.bf16.mxu1 %v4004_v1  ;;  %v3407_v3 = vld [vmem:[#allocation12 + $0x8] sm:$0xff]  ;;  %v3409_v4 = vld [vmem:[#allocation18] sm:$0xff] }
  0xb7   :  { %1312 = vst [vmem:[#allocation7] sm:$0xff] %v3185_v0  ;;  %1313 = vst [vmem:[#allocation7 + $0x8] sm:$0xff] %v3185_v0  ;;  %s3403_s15 = scalar_select %p172_p10, %s3992_s0, 8  ;;  %v3411_v5 = vld [vmem:[#allocation18 + $0x8] sm:$0xff]  ;;  %v3413_v6 = vld [vmem:[#allocation18 + $0x10] sm:$0xff] }
  0xb8   :  { %1314 = vst [vmem:[#allocation8] sm:$0xff] %v3185_v0  ;;  %1315 = vst [vmem:[#allocation8 + $0x8] sm:$0xff] %v3185_v0  ;;  %v3415_v7 = vld [vmem:[#allocation18 + $0x18] sm:$0xff]  ;;  %v3417_v8 = vld [vmem:[#allocation18 + $0x20] sm:$0xff] }
  0xb9   :  { %1316 = vst [vmem:[#allocation9] sm:$0xff] %v3185_v0  ;;  %1317 = vst [vmem:[#allocation9 + $0x8] sm:$0xff] %v3185_v0  ;;  %v3419_v9 = vld [vmem:[#allocation18 + $0x28] sm:$0xff]  ;;  %v3421_v10 = vld [vmem:[#allocation18 + $0x30] sm:$0xff] }
  0xba   :  { %4076 = vst [vmem:[#allocation37_spill] sm:$0xff] %v3405_v2  ;;  %4077 = vst [vmem:[#allocation38_spill] sm:$0xff] %v3407_v3  ;;  %v3423_v11 = vld [vmem:[#allocation18 + $0x38] sm:$0xff]  ;;  %v3425_v12 = vld [vmem:[#allocation18 + $0x40] sm:$0xff] }
  0xbb   :  { %4078 = vst [vmem:[#allocation39_spill] sm:$0xff] %v3409_v4  ;;  %4079 = vst [vmem:[#allocation40_spill] sm:$0xff] %v3411_v5  ;;  %v3427_v13 = vld [vmem:[#allocation18 + $0x48] sm:$0xff]  ;;  %v3429_v14 = vld [vmem:[#allocation18 + $0x50] sm:$0xff] }
  0xbc   :  { %4080 = vst [vmem:[#allocation41_spill] sm:$0xff] %v3413_v6  ;;  %4081 = vst [vmem:[#allocation42_spill] sm:$0xff] %v3415_v7  ;;  %v3431_v15 = vld [vmem:[#allocation18 + $0x58] sm:$0xff]  ;;  %v3433_v16 = vld [vmem:[#allocation18 + $0x60] sm:$0xff] }
  0xbd   :  { %4082 = vst [vmem:[#allocation43_spill] sm:$0xff] %v3417_v8  ;;  %4083 = vst [vmem:[#allocation44_spill] sm:$0xff] %v3419_v9  ;;  %v3435_v17 = vld [vmem:[#allocation18 + $0x68] sm:$0xff]  ;;  %v3437_v18 = vld [vmem:[#allocation18 + $0x70] sm:$0xff] }
  0xbe   :  { %4084 = vst [vmem:[#allocation45_spill] sm:$0xff] %v3421_v10  ;;  %4085 = vst [vmem:[#allocation46_spill] sm:$0xff] %v3423_v11  ;;  %v3439_v19 = vld [vmem:[#allocation18 + $0x78] sm:$0xff]  ;;  %v3441_v20 = vld [vmem:[#allocation18 + $0x80] sm:$0xff] }
  0xbf   :  { %4086 = vst [vmem:[#allocation47_spill] sm:$0xff] %v3425_v12  ;;  %4087 = vst [vmem:[#allocation48_spill] sm:$0xff] %v3427_v13  ;;  %v3443_v21 = vld [vmem:[#allocation18 + $0x88] sm:$0xff]  ;;  %v3445_v22 = vld [vmem:[#allocation18 + $0x90] sm:$0xff] }
  0xc0   :  { %4088 = vst [vmem:[#allocation49_spill] sm:$0xff] %v3429_v14  ;;  %4089 = vst [vmem:[#allocation50_spill] sm:$0xff] %v3431_v15  ;;  %v3447_v23 = vld [vmem:[#allocation18 + $0x98] sm:$0xff]  ;;  %v3449_v24 = vld [vmem:[#allocation18 + $0xa0] sm:$0xff] }
  0xc1   :  { %4090 = vst [vmem:[#allocation51_spill] sm:$0xff] %v3433_v16  ;;  %4091 = vst [vmem:[#allocation52_spill] sm:$0xff] %v3435_v17  ;;  %v3451_v25 = vld [vmem:[#allocation18 + $0xa8] sm:$0xff]  ;;  %v3453_v26 = vld [vmem:[#allocation18 + $0xb0] sm:$0xff] }
  0xc2   :  { %4092 = vst [vmem:[#allocation53_spill] sm:$0xff] %v3437_v18  ;;  %4093 = vst [vmem:[#allocation54_spill] sm:$0xff] %v3439_v19  ;;  %v3455_v27 = vld [vmem:[#allocation18 + $0xb8] sm:$0xff]  ;;  %v3457_v28 = vld [vmem:[#allocation18 + $0xc0] sm:$0xff] }
  0xc3   :  { %4094 = vst [vmem:[#allocation55_spill] sm:$0xff] %v3441_v20  ;;  %4095 = vst [vmem:[#allocation56_spill] sm:$0xff] %v3443_v21  ;;  %v3459_v29 = vld [vmem:[#allocation18 + $0xc8] sm:$0xff]  ;;  %v3461_v30 = vld [vmem:[#allocation18 + $0xd0] sm:$0xff] }
  0xc4   :  { %4096 = vst [vmem:[#allocation57_spill] sm:$0xff] %v3445_v22  ;;  %4097 = vst [vmem:[#allocation58_spill] sm:$0xff] %v3447_v23  ;;  %v3463_v31 = vld [vmem:[#allocation18 + $0xd8] sm:$0xff]  ;;  %v3465_v32 = vld [vmem:[#allocation18 + $0xe0] sm:$0xff] }
  0xc5   :  { %4098 = vst [vmem:[#allocation59_spill] sm:$0xff] %v3449_v24  ;;  %4099 = vst [vmem:[#allocation60_spill] sm:$0xff] %v3451_v25  ;;  %v3467_v33 = vld [vmem:[#allocation18 + $0xe8] sm:$0xff]  ;;  %v3469_v34 = vld [vmem:[#allocation18 + $0xf0] sm:$0xff] }
  0xc6   :  { %4100 = vst [vmem:[#allocation61_spill] sm:$0xff] %v3453_v26  ;;  %4101 = vst [vmem:[#allocation62_spill] sm:$0xff] %v3455_v27  ;;  %v3471_v35 = vld [vmem:[#allocation18 + $0xf8] sm:$0xff]  ;;  %v3473_v36 = vld [vmem:[#allocation23] sm:$0xff] }
  0xc7   :  { %4102 = vst [vmem:[#allocation63_spill] sm:$0xff] %v3457_v28  ;;  %4103 = vst [vmem:[#allocation64_spill] sm:$0xff] %v3459_v29  ;;  %v3475_v37 = vld [vmem:[#allocation23 + $0x8] sm:$0xff]  ;;  %v3477_v38 = vld [vmem:[#allocation23 + $0x10] sm:$0xff] }
  0xc8   :  { %4104 = vst [vmem:[#allocation65_spill] sm:$0xff] %v3475_v37  ;;  %v3479_v39 = vld [vmem:[#allocation23 + $0x18] sm:$0xff]  ;;  %v3481_v40 = vld [vmem:[#allocation23 + $0x20] sm:$0xff]  ;;  %v3483_v41 = vld [vmem:[#allocation23 + $0x28] sm:$0xff] }
  0xc9   :  { %4105 = vst [vmem:[#allocation66_spill] sm:$0xff] %v3481_v40  ;;  %4106 = vst [vmem:[#allocation67_spill] sm:$0xff] %v3483_v41  ;;  %v3485_v42 = vld [vmem:[#allocation23 + $0x30] sm:$0xff]  ;;  %v3487_v43 = vld [vmem:[#allocation23 + $0x38] sm:$0xff] }
  0xca   :  { %4107 = vst [vmem:[#allocation68_spill] sm:$0xff] %v3485_v42  ;;  %4108 = vst [vmem:[#allocation69_spill] sm:$0xff] %v3487_v43  ;;  %v3489_v44 = vld [vmem:[#allocation23 + $0x40] sm:$0xff]  ;;  %v3491_v45 = vld [vmem:[#allocation23 + $0x48] sm:$0xff] }
  0xcb   :  { %4109 = vst [vmem:[#allocation70_spill] sm:$0xff] %v3489_v44  ;;  %4110 = vst [vmem:[#allocation71_spill] sm:$0xff] %v3491_v45  ;;  %v3493_v46 = vld [vmem:[#allocation23 + $0x50] sm:$0xff]  ;;  %v3495_v47 = vld [vmem:[#allocation23 + $0x58] sm:$0xff] }
  0xcc   :  { %4111 = vst [vmem:[#allocation72_spill] sm:$0xff] %v3493_v46  ;;  %4112 = vst [vmem:[#allocation73_spill] sm:$0xff] %v3495_v47  ;;  %v3497_v48 = vld [vmem:[#allocation23 + $0x60] sm:$0xff]  ;;  %v3499_v49 = vld [vmem:[#allocation23 + $0x68] sm:$0xff] }
  0xcd   :  { %4113 = vst [vmem:[#allocation74_spill] sm:$0xff] %v3497_v48  ;;  %4114 = vst [vmem:[#allocation75_spill] sm:$0xff] %v3499_v49  ;;  %v3501_v50 = vld [vmem:[#allocation23 + $0x70] sm:$0xff]  ;;  %v3503_v51 = vld [vmem:[#allocation23 + $0x78] sm:$0xff] }
  0xce   :  { %4115 = vst [vmem:[#allocation76_spill] sm:$0xff] %v3501_v50  ;;  %4116 = vst [vmem:[#allocation77_spill] sm:$0xff] %v3503_v51  ;;  %v3505_v52 = vld [vmem:[#allocation23 + $0x80] sm:$0xff]  ;;  %v3507_v53 = vld [vmem:[#allocation23 + $0x88] sm:$0xff] }
  0xcf   :  { %4117 = vst [vmem:[#allocation78_spill] sm:$0xff] %v3505_v52  ;;  %4118 = vst [vmem:[#allocation79_spill] sm:$0xff] %v3507_v53  ;;  %v3509_v54 = vld [vmem:[#allocation23 + $0x90] sm:$0xff]  ;;  %v3511_v55 = vld [vmem:[#allocation23 + $0x98] sm:$0xff] }
  0xd0   :  { %4119 = vst [vmem:[#allocation80_spill] sm:$0xff] %v3509_v54  ;;  %4120 = vst [vmem:[#allocation81_spill] sm:$0xff] %v3511_v55  ;;  %v3513_v56 = vld [vmem:[#allocation23 + $0xa0] sm:$0xff]  ;;  %v3515_v57 = vld [vmem:[#allocation23 + $0xa8] sm:$0xff] }
  0xd1   :  { %4121 = vst [vmem:[#allocation82_spill] sm:$0xff] %v3513_v56  ;;  %4122 = vst [vmem:[#allocation83_spill] sm:$0xff] %v3515_v57  ;;  %v3517_v58 = vld [vmem:[#allocation23 + $0xb0] sm:$0xff]  ;;  %v3519_v59 = vld [vmem:[#allocation23 + $0xb8] sm:$0xff] }
  0xd2   :  { %4123 = vst [vmem:[#allocation84_spill] sm:$0xff] %v3517_v58  ;;  %4124 = vst [vmem:[#allocation85_spill] sm:$0xff] %v3519_v59  ;;  %v3521_v60 = vld [vmem:[#allocation23 + $0xc0] sm:$0xff]  ;;  %v3523_v61 = vld [vmem:[#allocation23 + $0xc8] sm:$0xff] }
  0xd3   :  { %4125 = vst [vmem:[#allocation86_spill] sm:$0xff] %v3521_v60  ;;  %4126 = vst [vmem:[#allocation87_spill] sm:$0xff] %v3523_v61  ;;  %v3525_v62 = vld [vmem:[#allocation23 + $0xd0] sm:$0xff]  ;;  %v3527_v63 = vld [vmem:[#allocation23 + $0xd8] sm:$0xff] }
  0xd4   :  { %4127 = vst [vmem:[#allocation88_spill] sm:$0xff] %v3525_v62  ;;  %4128 = vst [vmem:[#allocation89_spill] sm:$0xff] %v3527_v63  ;;  %v3529_v0 = vld [vmem:[#allocation23 + $0xe0] sm:$0xff]  ;;  %v3531_v1 = vld [vmem:[#allocation23 + $0xe8] sm:$0xff] }
  0xd5   :  { %4129 = vst [vmem:[#allocation90_spill] sm:$0xff] %v3529_v0  ;;  %4130 = vst [vmem:[#allocation91_spill] sm:$0xff] %v3531_v1  ;;  %v3533_v53 = vld [vmem:[#allocation23 + $0xf0] sm:$0xff]  ;;  %v3535_v56 = vld [vmem:[#allocation23 + $0xf8] sm:$0xff] }
  0xd6   :  { %4131 = vst [vmem:[#allocation92_spill] sm:$0xff] %v3533_v53  ;;  %4132 = vst [vmem:[#allocation93_spill] sm:$0xff] %v3535_v56  ;;  %v2743_v57 = vld [vmem:[#allocation17 + $0x4] ss:$16 sps:$4 sm:$0xff]   ;;  %v2745_v58 = vld [vmem:[#allocation17 + $0xc] ss:$16 sps:$4 sm:$0xff]  }
  0xd7   :  { %452 = vmatprep.subr.bf16.mxu0 %v2743_v57  ;;  %v2747_v59 = vld [vmem:[#allocation17] ss:$16 sps:$4 sm:$0xff]   ;;  %v2748_v55 = vld [vmem:[#allocation17 + $0x8] ss:$16 sps:$4 sm:$0xff]   ;;  %565 = vmatprep.subr.bf16.mxu1 %v2745_v58  ;;  %v2749_v60 = vld [vmem:[#allocation17 + $0x24] ss:$16 sps:$4 sm:$0xff]  }
  0xd8   :  { %453 = vmatpush1.bf16.msra.mxu0 %v2747_v59  ;;  %566 = vmatpush1.bf16.msra.mxu1 %v2748_v55  ;;  %v2751_v61 = vld [vmem:[#allocation17 + $0x2c] ss:$16 sps:$4 sm:$0xff]   ;;  %v2753_v62 = vld [vmem:[#allocation17 + $0x20] ss:$16 sps:$4 sm:$0xff]   ;;  %v2754_v63 = vld [vmem:[#allocation17 + $0x28] ss:$16 sps:$4 sm:$0xff]  }
  0xd9   :  { %454 = vmatprep.subr.bf16.mxu0 %v2749_v60  ;;  %567 = vmatprep.subr.bf16.mxu1 %v2751_v61  ;;  %v2755_v0 = vld [vmem:[#allocation17 + $0x44] ss:$16 sps:$4 sm:$0xff]   ;;  %v2757_v1 = vld [vmem:[#allocation17 + $0x4c] ss:$16 sps:$4 sm:$0xff]   ;;  %v2759_v52 = vld [vmem:[#allocation17 + $0x40] ss:$16 sps:$4 sm:$0xff]  }
  0xda   :  { %v2760_v53 = vld [vmem:[#allocation17 + $0x48] ss:$16 sps:$4 sm:$0xff]   ;;  %v2761_v56 = vld [vmem:[#allocation17 + $0x64] ss:$16 sps:$4 sm:$0xff]   ;;  %v2763_v57 = vld [vmem:[#allocation17 + $0x6c] ss:$16 sps:$4 sm:$0xff]  }
  0xdb   :  { %v2765_v54 = vld [vmem:[#allocation17 + $0x60] ss:$16 sps:$4 sm:$0xff]   ;;  %v2766_v58 = vld [vmem:[#allocation17 + $0x68] ss:$16 sps:$4 sm:$0xff]   ;;  %v2767_v55 = vld [vmem:[#allocation17 + $0x84] ss:$16 sps:$4 sm:$0xff]  }
  0xdc   :  { %455 = vmatpush1.bf16.msra.mxu0 %v2753_v62  ;;  %568 = vmatpush1.bf16.msra.mxu1 %v2754_v63  ;;  %v2769_v59 = vld [vmem:[#allocation17 + $0x8c] ss:$16 sps:$4 sm:$0xff]   ;;  %v2771_v60 = vld [vmem:[#allocation17 + $0x80] ss:$16 sps:$4 sm:$0xff]   ;;  %v2772_v61 = vld [vmem:[#allocation17 + $0x88] ss:$16 sps:$4 sm:$0xff]  }
  0xdd   :  { %456 = vmatprep.subr.bf16.mxu0 %v2755_v0  ;;  %569 = vmatprep.subr.bf16.mxu1 %v2757_v1  ;;  %v2773_v49 = vld [vmem:[#allocation17 + $0xa4] ss:$16 sps:$4 sm:$0xff]   ;;  %v2775_v62 = vld [vmem:[#allocation17 + $0xac] ss:$16 sps:$4 sm:$0xff]   ;;  %v2777_v63 = vld [vmem:[#allocation17 + $0xa0] ss:$16 sps:$4 sm:$0xff]  }
  0xde   :  { %v2778_v1 = vld [vmem:[#allocation17 + $0xa8] ss:$16 sps:$4 sm:$0xff]   ;;  %v2779_v0 = vld [vmem:[#allocation17 + $0xc4] ss:$16 sps:$4 sm:$0xff]   ;;  %v2832_v51 = vld [vmem:[#allocation21 + $0xac] ss:$16 sps:$4 sm:$0xff]  }
  0xdf   :  { %v2846_v48 = vld [vmem:[#allocation21 + $0xec] ss:$16 sps:$4 sm:$0xff]   ;;  %v774_v37 = vld [vmem:[#allocation24] sm:$0xf] }
  0xe0   :  { %457 = vmatpush1.bf16.msra.mxu0 %v2759_v52  ;;  %570 = vmatpush1.bf16.msra.mxu1 %v2760_v53  ;;  %v2781_v52 = vld [vmem:[#allocation17 + $0xcc] ss:$16 sps:$4 sm:$0xff]   ;;  %v2783_v53 = vld [vmem:[#allocation17 + $0xc0] ss:$16 sps:$4 sm:$0xff]  }
  0xe1   :  { %458 = vmatprep.subr.bf16.mxu0 %v2761_v56  ;;  %571 = vmatprep.subr.bf16.mxu1 %v2763_v57  ;;  %v2784_v56 = vld [vmem:[#allocation17 + $0xc8] ss:$16 sps:$4 sm:$0xff]   ;;  %v2785_v57 = vld [vmem:[#allocation17 + $0xe4] ss:$16 sps:$4 sm:$0xff]  }
  0xe4   :  { %459 = vmatpush1.bf16.msra.mxu0 %v2765_v54  ;;  %572 = vmatpush1.bf16.msra.mxu1 %v2766_v58  ;;  %v2787_v54 = vld [vmem:[#allocation17 + $0xec] ss:$16 sps:$4 sm:$0xff]   ;;  %v2789_v58 = vld [vmem:[#allocation17 + $0xe0] ss:$16 sps:$4 sm:$0xff]  }
  0xe5   :  { %460 = vmatprep.subr.bf16.mxu0 %v2767_v55  ;;  %573 = vmatprep.subr.bf16.mxu1 %v2769_v59  ;;  %v2790_v55 = vld [vmem:[#allocation17 + $0xe8] ss:$16 sps:$4 sm:$0xff]  }
  0xe6   :  { %v2794_v59 = vld [vmem:[#allocation21 + $0x4] ss:$16 sps:$4 sm:$0xff]  }
  0xe8   :  { %461 = vmatpush1.bf16.msra.mxu0 %v2771_v60  ;;  %574 = vmatpush1.bf16.msra.mxu1 %v2772_v61  ;;  %v2797_v60 = vld [vmem:[#allocation21 + $0xc] ss:$16 sps:$4 sm:$0xff]  }
  0xe9   :  { %462 = vmatprep.subr.bf16.mxu0 %v2773_v49  ;;  %575 = vmatprep.subr.bf16.mxu1 %v2775_v62  ;;  %v3537_v61 = vld [vmem:[#allocation15] sm:$0xff]   ;;  %v2795_v62 = vld [vmem:[#allocation21 + $0x8] ss:$16 sps:$4 sm:$0xff]  }
  0xea   :  { %v2792_v49 = vld [vmem:[#allocation21] ss:$16 sps:$4 sm:$0xff]  }
  0xec   :  { %463 = vmatpush1.bf16.msra.mxu0 %v2777_v63  ;;  %576 = vmatpush1.bf16.msra.mxu1 %v2778_v1  ;;  %v2801_v63 = vld [vmem:[#allocation21 + $0x24] ss:$16 sps:$4 sm:$0xff]   ;;  %v2804_v1 = vld [vmem:[#allocation21 + $0x2c] ss:$16 sps:$4 sm:$0xff]  }
  0xed   :  { %464 = vmatprep.subr.bf16.mxu0 %v2779_v0  ;;  %577 = vmatprep.subr.bf16.mxu1 %v2781_v52  ;;  %v2799_v0 = vld [vmem:[#allocation21 + $0x20] ss:$16 sps:$4 sm:$0xff]   ;;  %v2802_v52 = vld [vmem:[#allocation21 + $0x28] ss:$16 sps:$4 sm:$0xff]  }
  0xf0   :  { %465 = vmatpush1.bf16.msra.mxu0 %v2783_v53  ;;  %578 = vmatpush1.bf16.msra.mxu1 %v2784_v56  ;;  %v2808_v53 = vld [vmem:[#allocation21 + $0x44] ss:$16 sps:$4 sm:$0xff]   ;;  %v4133_v56 = vmov 0  }
  0xf1   :  { %466 = vmatprep.subr.bf16.mxu0 %v2785_v57  ;;  %579 = vmatprep.subr.bf16.mxu1 %v2787_v54  ;;  %v2811_v57 = vld [vmem:[#allocation21 + $0x4c] ss:$16 sps:$4 sm:$0xff]   ;;  %v3543_v54 = vld [vmem:[#allocation15 + $0x8] sm:$0xff]  }
  0xf4   :  { %467 = vmatpush1.bf16.msra.mxu0 %v2789_v58  ;;  %580 = vmatpush1.bf16.msra.mxu1 %v2790_v55  ;;  %v2806_v58 = vld [vmem:[#allocation21 + $0x40] ss:$16 sps:$4 sm:$0xff]   ;;  %v2809_v55 = vld [vmem:[#allocation21 + $0x48] ss:$16 sps:$4 sm:$0xff]  }
  0xf5   :  { %956 = vmatprep.subr.bf16.mxu0 %v2794_v59  ;;  %1069 = vmatprep.subr.bf16.mxu1 %v2797_v60  ;;  %v2815_v59 = vld [vmem:[#allocation21 + $0x64] ss:$16 sps:$4 sm:$0xff]   ;;  %v2818_v60 = vld [vmem:[#allocation21 + $0x6c] ss:$16 sps:$4 sm:$0xff]  }
  0xf7   :  { %485 = vmatmul.mubr.bf16.vlgmr.msra.gmra.mrb[0].mxu0 %v3537_v61  ;;  %598 = vmatmul.mubr.bf16.vlgmr.msra.gmra.mrb[0].mxu1 %v3537_v61 }
  0xf8   :  { %957 = vmatpush1.bf16.msra.mxu0 %v2792_v49  ;;  %1070 = vmatpush1.bf16.msra.mxu1 %v2795_v62  ;;  %v2813_v49 = vld [vmem:[#allocation21 + $0x60] ss:$16 sps:$4 sm:$0xff]   ;;  %v2816_v62 = vld [vmem:[#allocation21 + $0x68] ss:$16 sps:$4 sm:$0xff]  }
  0xf9   :  { %494 = vmatprep.mubr.bf16.mxu0 %v4133_v56  ;;  %607 = vmatprep.mubr.bf16.mxu1 %v4133_v56 }
  0xfa   :  { %958 = vmatprep.subr.bf16.mxu0 %v2801_v63  ;;  %1071 = vmatprep.subr.bf16.mxu1 %v2804_v1  ;;  %v2822_v63 = vld [vmem:[#allocation21 + $0x84] ss:$16 sps:$4 sm:$0xff]   ;;  %v2825_v1 = vld [vmem:[#allocation21 + $0x8c] ss:$16 sps:$4 sm:$0xff]  }
  0xfc   :  { %959 = vmatpush1.bf16.msra.mxu0 %v2799_v0  ;;  %1072 = vmatpush1.bf16.msra.mxu1 %v2802_v52  ;;  %v3549_v0 = vld [vmem:[#allocation15 + $0x10] sm:$0xff]  }
  0xfd   :  { %960 = vmatprep.subr.bf16.mxu0 %v2808_v53  ;;  %1073 = vmatprep.subr.bf16.mxu1 %v2811_v57  ;;  %v2820_v52 = vld [vmem:[#allocation21 + $0x80] ss:$16 sps:$4 sm:$0xff]   ;;  %v2823_v53 = vld [vmem:[#allocation21 + $0x88] ss:$16 sps:$4 sm:$0xff]   ;;  %v2829_v57 = vld [vmem:[#allocation21 + $0xa4] ss:$16 sps:$4 sm:$0xff]  }
  0xff   :  { %495 = vmatmul.mubr.bf16.gmra.mrb[4].mxu0 %v3543_v54  ;;  %608 = vmatmul.mubr.bf16.gmra.mrb[4].mxu1 %v3543_v54 }
 0x100   :  { %504 = vmatprep.mubr.bf16.mxu0 %v4133_v56  ;;  %617 = vmatprep.mubr.bf16.mxu1 %v4133_v56 }
 0x101   :  { %961 = vmatpush1.bf16.msra.mxu0 %v2806_v58  ;;  %1074 = vmatpush1.bf16.msra.mxu1 %v2809_v55  ;;  %v2827_v58 = vld [vmem:[#allocation21 + $0xa0] ss:$16 sps:$4 sm:$0xff]   ;;  %v2830_v55 = vld [vmem:[#allocation21 + $0xa8] ss:$16 sps:$4 sm:$0xff]  }
 0x102   :  { %962 = vmatprep.subr.bf16.mxu0 %v2815_v59  ;;  %1075 = vmatprep.subr.bf16.mxu1 %v2818_v60  ;;  %v2836_v59 = vld [vmem:[#allocation21 + $0xc4] ss:$16 sps:$4 sm:$0xff]   ;;  %v2839_v60 = vld [vmem:[#allocation21 + $0xcc] ss:$16 sps:$4 sm:$0xff]  }
 0x105   :  { %963 = vmatpush1.bf16.msra.mxu0 %v2813_v49  ;;  %1076 = vmatpush1.bf16.msra.mxu1 %v2816_v62  ;;  %v2812_v49 = vld [vmem:[#allocation15 + $0x18] sm:$0xff]   ;;  %v2834_v62 = vld [vmem:[#allocation21 + $0xc0] ss:$16 sps:$4 sm:$0xff]  }
 0x106   :  { %964 = vmatprep.subr.bf16.mxu0 %v2822_v63  ;;  %1077 = vmatprep.subr.bf16.mxu1 %v2825_v1  ;;  %v2837_v63 = vld [vmem:[#allocation21 + $0xc8] ss:$16 sps:$4 sm:$0xff]   ;;  %v2843_v1 = vld [vmem:[#allocation21 + $0xe4] ss:$16 sps:$4 sm:$0xff]  }
 0x107   :  { %505 = vmatmul.mubr.bf16.gmra.mrb[8].mxu0 %v3549_v0  ;;  %618 = vmatmul.mubr.bf16.gmra.mrb[8].mxu1 %v3549_v0 }
 0x108   :  { %514 = vmatprep.mubr.bf16.mxu0 %v4133_v56  ;;  %627 = vmatprep.mubr.bf16.mxu1 %v4133_v56 }
 0x109   :  { %965 = vmatpush1.bf16.msra.mxu0 %v2820_v52  ;;  %1078 = vmatpush1.bf16.msra.mxu1 %v2823_v53  ;;  %v2844_v52 = vld [vmem:[#allocation21 + $0xe8] ss:$16 sps:$4 sm:$0xff]   ;;  %v2819_v53 = vld [vmem:[#allocation15 + $0x20] sm:$0xff]  }
 0x10a   :  { %966 = vmatprep.subr.bf16.mxu0 %v2829_v57  ;;  %1079 = vmatprep.subr.bf16.mxu1 %v2832_v51  ;;  %v2841_v51 = vld [vmem:[#allocation21 + $0xe0] ss:$16 sps:$4 sm:$0xff]   ;;  %v2826_v57 = vld [vmem:[#allocation15 + $0x28] sm:$0xff]  }
 0x10d   :  { %967 = vmatpush1.bf16.msra.mxu0 %v2827_v58  ;;  %1080 = vmatpush1.bf16.msra.mxu1 %v2830_v55  ;;  %v2833_v58 = vld [vmem:[#allocation15 + $0x30] sm:$0xff]  }
 0x10e   :  { %968 = vmatprep.subr.bf16.mxu0 %v2836_v59  ;;  %1081 = vmatprep.subr.bf16.mxu1 %v2839_v60  ;;  %v222_v59 = vld [vmem:[#allocation20] sm:$0xf] }
 0x10f   :  { %515 = vmatmul.mubr.bf16.gmra.mrb[12].mxu0 %v2812_v49  ;;  %628 = vmatmul.mubr.bf16.gmra.mrb[12].mxu1 %v2812_v49 }
 0x110   :  { %524 = vmatprep.mubr.bf16.mxu0 %v4133_v56  ;;  %637 = vmatprep.mubr.bf16.mxu1 %v4133_v56 }
 0x111   :  { %969 = vmatpush1.bf16.msra.mxu0 %v2834_v62  ;;  %1082 = vmatpush1.bf16.msra.mxu1 %v2837_v63 }
 0x112   :  { %970 = vmatprep.subr.bf16.mxu0 %v2843_v1  ;;  %1083 = vmatprep.subr.bf16.mxu1 %v2846_v48  ;;  %v2840_v48 = vld [vmem:[#allocation15 + $0x38] sm:$0xff]  }
 0x115   :  { %971 = vmatpush1.bf16.msra.mxu0 %v2841_v51  ;;  %1084 = vmatpush1.bf16.msra.mxu1 %v2844_v52 }
 0x117   :  { %525 = vmatmul.mubr.bf16.gmra.mrb[16].mxu0 %v2819_v53  ;;  %638 = vmatmul.mubr.bf16.gmra.mrb[16].mxu1 %v2819_v53 }
 0x118   :  { %534 = vmatprep.mubr.bf16.mxu0 %v4133_v56  ;;  %647 = vmatprep.mubr.bf16.mxu1 %v4133_v56 }
 0x11f   :  { %535 = vmatmul.mubr.bf16.gmra.mrb[20].mxu0 %v2826_v57  ;;  %648 = vmatmul.mubr.bf16.gmra.mrb[20].mxu1 %v2826_v57 }
 0x120   :  { %544 = vmatprep.mubr.bf16.mxu0 %v4133_v56  ;;  %657 = vmatprep.mubr.bf16.mxu1 %v4133_v56 }
 0x127   :  { %545 = vmatmul.mubr.bf16.gmra.mrb[24].mxu0 %v2833_v58  ;;  %658 = vmatmul.mubr.bf16.gmra.mrb[24].mxu1 %v2833_v58 }
 0x128   :  { %554 = vmatprep.mubr.bf16.mxu0 %v4133_v56  ;;  %667 = vmatprep.mubr.bf16.mxu1 %v4133_v56 }
 0x12f   :  { %555 = vmatmul.mubr.bf16.gmra.mrb[28].mxu0 %v2840_v48  ;;  %668 = vmatmul.mubr.bf16.gmra.mrb[28].mxu1 %v2840_v48 }
 0x130   :  { %988 = vmatprep.mubr.bf16.mxu0 %v4133_v56  ;;  %1101 = vmatprep.mubr.bf16.mxu1 %v4133_v56 }
 0x137   :  { %989 = vmatmul.mubr.bf16.vlgmr.msra.gmra.mrb[32].mxu0 %v3537_v61  ;;  %1102 = vmatmul.mubr.bf16.vlgmr.msra.gmra.mrb[32].mxu1 %v3537_v61  ;;  %v224_v61 = vlaneseq }
 0x138   :  { %998 = vmatprep.mubr.bf16.mxu0 %v4133_v56  ;;  %1111 = vmatprep.mubr.bf16.mxu1 %v4133_v56 }
 0x13f   :  { %999 = vmatmul.mubr.bf16.gmra.mrb[36].mxu0 %v3543_v54  ;;  %1112 = vmatmul.mubr.bf16.gmra.mrb[36].mxu1 %v3543_v54  ;;  %v3585_v54 = vshrl.u32 %v224_v61, 7 }
 0x140   :  { %1008 = vmatprep.mubr.bf16.mxu0 %v4133_v56  ;;  %1121 = vmatprep.mubr.bf16.mxu1 %v4133_v56 }
 0x141   :  { %v4026_v55 = vsub.s32 2, %v3585_v54  ;;  %v4030_v60 = vsub.s32 1, %v3585_v54 }
 0x143   :  { %v3601_v51 = vrot.slane %v222_v59, %v4030_v60 }
 0x147   :  { %1009 = vmatmul.mubr.bf16.gmra.mrb[40].mxu0 %v3549_v0  ;;  %1122 = vmatmul.mubr.bf16.gmra.mrb[40].mxu1 %v3549_v0  ;;  %v4025_v0 = vsub.s32 0, %v3585_v54 }
 0x148   :  { %1018 = vmatprep.mubr.bf16.mxu0 %v4133_v56  ;;  %1131 = vmatprep.mubr.bf16.mxu1 %v4133_v56 }
 0x149   :  { %v3593_v62 = vrot.slane %v222_v59, %v4025_v0 }
 0x14f   :  { %1019 = vmatmul.mubr.bf16.gmra.mrb[44].mxu0 %v2812_v49  ;;  %1132 = vmatmul.mubr.bf16.gmra.mrb[44].mxu1 %v2812_v49  ;;  %v4032_v49 = vsub.s32 3, %v3585_v54 }
 0x150   :  { %1028 = vmatprep.mubr.bf16.mxu0 %v4133_v56  ;;  %1141 = vmatprep.mubr.bf16.mxu1 %v4133_v56 }
 0x151   :  { %v3605_v52 = vrot.slane %v222_v59, %v4032_v49 }
 0x157   :  { %1029 = vmatmul.mubr.bf16.gmra.mrb[48].mxu0 %v2819_v53  ;;  %1142 = vmatmul.mubr.bf16.gmra.mrb[48].mxu1 %v2819_v53 }
 0x158   :  { %1038 = vmatprep.mubr.bf16.mxu0 %v4133_v56  ;;  %1151 = vmatprep.mubr.bf16.mxu1 %v4133_v56 }
 0x15f   :  { %1039 = vmatmul.mubr.bf16.gmra.mrb[52].mxu0 %v2826_v57  ;;  %1152 = vmatmul.mubr.bf16.gmra.mrb[52].mxu1 %v2826_v57 }
 0x160   :  { %1048 = vmatprep.mubr.bf16.mxu0 %v4133_v56  ;;  %1161 = vmatprep.mubr.bf16.mxu1 %v4133_v56 }
 0x167   :  { %1049 = vmatmul.mubr.bf16.gmra.mrb[56].mxu0 %v2833_v58  ;;  %1162 = vmatmul.mubr.bf16.gmra.mrb[56].mxu1 %v2833_v58 }
 0x168   :  { %1058 = vmatprep.mubr.bf16.mxu0 %v4133_v56  ;;  %1171 = vmatprep.mubr.bf16.mxu1 %v4133_v56  ;;  %v3597_v56 = vrot.slane %v222_v59, %v4026_v55 }
 0x16f   :  { %1059 = vmatmul.mubr.bf16.gmra.mrb[60].mxu0 %v2840_v48  ;;  %1172 = vmatmul.mubr.bf16.gmra.mrb[60].mxu1 %v2840_v48 }
 0x1ca   :  { %v486_v63 = vpop.f32.mrb[0].mxu0  ;;  %v599_v1 = vpop.f32.mrb[0].mxu1 }
 0x1cb   :  { %v488_v53 = vpop.f32.mrb[1].mxu0  ;;  %v601_v57 = vpop.f32.mrb[1].mxu1  ;;  %v487_v61 = vadd.f32 %v486_v63, %v3593_v62  ;;  %v600_v0 = vadd.f32 %v599_v1, %v3597_v56 }
 0x1cc   :  { %v490_v58 = vpop.f32.mrb[2].mxu0  ;;  %v603_v48 = vpop.f32.mrb[2].mxu1  ;;  %v489_v60 = vadd.f32 %v488_v53, %v3601_v51  ;;  %v602_v44 = vadd.f32 %v601_v57, %v3605_v52 }
 0x1cd   :  { %v491_v55 = vadd.f32 %v490_v58, %v3593_v62  ;;  %v604_v50 = vadd.f32 %v603_v48, %v3597_v56  ;;  %v492_v45 = vpop.f32.mrb[3].mxu0  ;;  %v605_v47 = vpop.f32.mrb[3].mxu1 }
 0x1ce   :  { %v493_v59 = vadd.f32 %v492_v45, %v3601_v51  ;;  %v606_v49 = vadd.f32 %v605_v47, %v3605_v52 }
 0x1cf   :  { %v678_v46 = vpack.c.bf16 %v491_v55, %v487_v61  ;;  %v680_v41 = vpack.c.bf16 %v604_v50, %v600_v0 }
 0x1d0   :  { %v679_v43 = vpack.c.bf16 %v493_v59, %v489_v60  ;;  %v681_v63 = vpack.c.bf16 %v606_v49, %v602_v44 }
 0x1d1   :  { %710 = vst [vmem:[#allocation2] sm:$0xff] %v678_v46  ;;  %712 = vst [vmem:[#allocation2 + $0x10] sm:$0xff] %v680_v41 }
 0x1d2   :  { %711 = vst [vmem:[#allocation2 + $0x8] sm:$0xff] %v679_v43  ;;  %713 = vst [vmem:[#allocation2 + $0x18] sm:$0xff] %v681_v63  ;;  %v496_v1 = vpop.f32.mrb[4].mxu0  ;;  %v609_v58 = vpop.f32.mrb[4].mxu1 }
 0x1d3   :  { %v498_v48 = vpop.f32.mrb[5].mxu0  ;;  %v611_v40 = vpop.f32.mrb[5].mxu1  ;;  %v497_v57 = vadd.f32 %v496_v1, %v3593_v62  ;;  %v610_v45 = vadd.f32 %v609_v58, %v3597_v56 }
 0x1d4   :  { %v500_v42 = vpop.f32.mrb[6].mxu0  ;;  %v613_v53 = vpop.f32.mrb[6].mxu1  ;;  %v499_v41 = vadd.f32 %v498_v48, %v3601_v51  ;;  %v612_v43 = vadd.f32 %v611_v40, %v3605_v52 }
 0x1d5   :  { %v501_v47 = vadd.f32 %v500_v42, %v3593_v62  ;;  %v614_v50 = vadd.f32 %v613_v53, %v3597_v56  ;;  %v502_v0 = vpop.f32.mrb[7].mxu0  ;;  %v615_v44 = vpop.f32.mrb[7].mxu1 }
 0x1d6   :  { %v503_v46 = vadd.f32 %v502_v0, %v3601_v51  ;;  %v616_v55 = vadd.f32 %v615_v44, %v3605_v52 }
 0x1d7   :  { %v682_v60 = vpack.c.bf16 %v501_v47, %v497_v57  ;;  %v684_v49 = vpack.c.bf16 %v614_v50, %v610_v45 }
 0x1d8   :  { %v683_v61 = vpack.c.bf16 %v503_v46, %v499_v41  ;;  %v685_v59 = vpack.c.bf16 %v616_v55, %v612_v43 }
 0x1d9   :  { %714 = vst [vmem:[#allocation2 + $0x20] sm:$0xff] %v682_v60  ;;  %716 = vst [vmem:[#allocation2 + $0x30] sm:$0xff] %v684_v49 }
 0x1da   :  { %715 = vst [vmem:[#allocation2 + $0x28] sm:$0xff] %v683_v61  ;;  %717 = vst [vmem:[#allocation2 + $0x38] sm:$0xff] %v685_v59  ;;  %v506_v42 = vpop.f32.mrb[8].mxu0  ;;  %v619_v63 = vpop.f32.mrb[8].mxu1 }
 0x1db   :  { %v508_v1 = vpop.f32.mrb[9].mxu0  ;;  %v621_v58 = vpop.f32.mrb[9].mxu1  ;;  %v507_v40 = vadd.f32 %v506_v42, %v3593_v62  ;;  %v620_v0 = vadd.f32 %v619_v63, %v3597_v56 }
 0x1dc   :  { %v510_v53 = vpop.f32.mrb[10].mxu0  ;;  %v623_v48 = vpop.f32.mrb[10].mxu1  ;;  %v509_v50 = vadd.f32 %v508_v1, %v3601_v51  ;;  %v622_v41 = vadd.f32 %v621_v58, %v3605_v52 }
 0x1dd   :  { %v511_v44 = vadd.f32 %v510_v53, %v3593_v62  ;;  %v624_v57 = vadd.f32 %v623_v48, %v3597_v56  ;;  %v512_v45 = vpop.f32.mrb[11].mxu0  ;;  %v625_v47 = vpop.f32.mrb[11].mxu1 }
 0x1de   :  { %v513_v43 = vadd.f32 %v512_v45, %v3601_v51  ;;  %v626_v46 = vadd.f32 %v625_v47, %v3605_v52 }
 0x1df   :  { %v686_v55 = vpack.c.bf16 %v511_v44, %v507_v40  ;;  %v688_v60 = vpack.c.bf16 %v624_v57, %v620_v0 }
 0x1e0   :  { %v687_v49 = vpack.c.bf16 %v513_v43, %v509_v50  ;;  %v689_v61 = vpack.c.bf16 %v626_v46, %v622_v41 }
 0x1e1   :  { %718 = vst [vmem:[#allocation2 + $0x40] sm:$0xff] %v686_v55  ;;  %720 = vst [vmem:[#allocation2 + $0x50] sm:$0xff] %v688_v60 }
 0x1e2   :  { %719 = vst [vmem:[#allocation2 + $0x48] sm:$0xff] %v687_v49  ;;  %721 = vst [vmem:[#allocation2 + $0x58] sm:$0xff] %v689_v61  ;;  %v516_v59 = vpop.f32.mrb[12].mxu0  ;;  %v629_v42 = vpop.f32.mrb[12].mxu1 }
 0x1e3   :  { %v518_v63 = vpop.f32.mrb[13].mxu0  ;;  %v631_v53 = vpop.f32.mrb[13].mxu1  ;;  %v517_v58 = vadd.f32 %v516_v59, %v3593_v62  ;;  %v630_v45 = vadd.f32 %v629_v42, %v3597_v56 }
 0x1e4   :  { %v520_v48 = vpop.f32.mrb[14].mxu0  ;;  %v633_v1 = vpop.f32.mrb[14].mxu1  ;;  %v519_v57 = vadd.f32 %v518_v63, %v3601_v51  ;;  %v632_v50 = vadd.f32 %v631_v53, %v3605_v52 }
 0x1e5   :  { %v521_v47 = vadd.f32 %v520_v48, %v3593_v62  ;;  %v634_v40 = vadd.f32 %v633_v1, %v3597_v56  ;;  %v522_v0 = vpop.f32.mrb[15].mxu0  ;;  %v635_v44 = vpop.f32.mrb[15].mxu1 }
 0x1e6   :  { %v523_v41 = vadd.f32 %v522_v0, %v3601_v51  ;;  %v636_v43 = vadd.f32 %v635_v44, %v3605_v52 }
 0x1e7   :  { %v690_v46 = vpack.c.bf16 %v521_v47, %v517_v58  ;;  %v692_v55 = vpack.c.bf16 %v634_v40, %v630_v45 }
 0x1e8   :  { %v691_v60 = vpack.c.bf16 %v523_v41, %v519_v57  ;;  %v693_v49 = vpack.c.bf16 %v636_v43, %v632_v50 }
 0x1e9   :  { %722 = vst [vmem:[#allocation2 + $0x60] sm:$0xff] %v690_v46  ;;  %724 = vst [vmem:[#allocation2 + $0x70] sm:$0xff] %v692_v55 }
 0x1ea   :  { %723 = vst [vmem:[#allocation2 + $0x68] sm:$0xff] %v691_v60  ;;  %725 = vst [vmem:[#allocation2 + $0x78] sm:$0xff] %v693_v49  ;;  %v526_v61 = vpop.f32.mrb[16].mxu0  ;;  %v639_v59 = vpop.f32.mrb[16].mxu1 }
 0x1eb   :  { %v528_v42 = vpop.f32.mrb[17].mxu0  ;;  %v641_v48 = vpop.f32.mrb[17].mxu1  ;;  %v527_v53 = vadd.f32 %v526_v61, %v3593_v62  ;;  %v640_v0 = vadd.f32 %v639_v59, %v3597_v56 }
 0x1ec   :  { %v530_v1 = vpop.f32.mrb[18].mxu0  ;;  %v643_v63 = vpop.f32.mrb[18].mxu1  ;;  %v529_v40 = vadd.f32 %v528_v42, %v3601_v51  ;;  %v642_v57 = vadd.f32 %v641_v48, %v3605_v52 }
 0x1ed   :  { %v531_v44 = vadd.f32 %v530_v1, %v3593_v62  ;;  %v644_v58 = vadd.f32 %v643_v63, %v3597_v56  ;;  %v532_v45 = vpop.f32.mrb[19].mxu0  ;;  %v645_v47 = vpop.f32.mrb[19].mxu1 }
 0x1ee   :  { %v533_v50 = vadd.f32 %v532_v45, %v3601_v51  ;;  %v646_v41 = vadd.f32 %v645_v47, %v3605_v52 }
 0x1ef   :  { %v694_v43 = vpack.c.bf16 %v531_v44, %v527_v53  ;;  %v696_v46 = vpack.c.bf16 %v644_v58, %v640_v0 }
 0x1f0   :  { %v695_v55 = vpack.c.bf16 %v533_v50, %v529_v40  ;;  %v697_v60 = vpack.c.bf16 %v646_v41, %v642_v57 }
 0x1f1   :  { %726 = vst [vmem:[#allocation2 + $0x80] sm:$0xff] %v694_v43  ;;  %728 = vst [vmem:[#allocation2 + $0x90] sm:$0xff] %v696_v46 }
 0x1f2   :  { %727 = vst [vmem:[#allocation2 + $0x88] sm:$0xff] %v695_v55  ;;  %729 = vst [vmem:[#allocation2 + $0x98] sm:$0xff] %v697_v60  ;;  %v536_v49 = vpop.f32.mrb[20].mxu0  ;;  %v649_v61 = vpop.f32.mrb[20].mxu1 }
 0x1f3   :  { %v538_v59 = vpop.f32.mrb[21].mxu0  ;;  %v651_v1 = vpop.f32.mrb[21].mxu1  ;;  %v537_v48 = vadd.f32 %v536_v49, %v3593_v62  ;;  %v650_v45 = vadd.f32 %v649_v61, %v3597_v56 }
 0x1f4   :  { %v540_v63 = vpop.f32.mrb[22].mxu0  ;;  %v653_v42 = vpop.f32.mrb[22].mxu1  ;;  %v539_v58 = vadd.f32 %v538_v59, %v3601_v51  ;;  %v652_v40 = vadd.f32 %v651_v1, %v3605_v52 }
 0x1f5   :  { %v541_v47 = vadd.f32 %v540_v63, %v3593_v62  ;;  %v654_v53 = vadd.f32 %v653_v42, %v3597_v56  ;;  %v542_v0 = vpop.f32.mrb[23].mxu0  ;;  %v655_v44 = vpop.f32.mrb[23].mxu1 }
 0x1f6   :  { %v543_v57 = vadd.f32 %v542_v0, %v3601_v51  ;;  %v656_v50 = vadd.f32 %v655_v44, %v3605_v52 }
 0x1f7   :  { %v698_v41 = vpack.c.bf16 %v541_v47, %v537_v48  ;;  %v700_v43 = vpack.c.bf16 %v654_v53, %v650_v45 }
 0x1f8   :  { %v699_v46 = vpack.c.bf16 %v543_v57, %v539_v58  ;;  %v701_v55 = vpack.c.bf16 %v656_v50, %v652_v40 }
 0x1f9   :  { %730 = vst [vmem:[#allocation2 + $0xa0] sm:$0xff] %v698_v41  ;;  %732 = vst [vmem:[#allocation2 + $0xb0] sm:$0xff] %v700_v43 }
 0x1fa   :  { %731 = vst [vmem:[#allocation2 + $0xa8] sm:$0xff] %v699_v46  ;;  %733 = vst [vmem:[#allocation2 + $0xb8] sm:$0xff] %v701_v55  ;;  %v546_v60 = vpop.f32.mrb[24].mxu0  ;;  %v659_v49 = vpop.f32.mrb[24].mxu1 }
 0x1fb   :  { %v548_v61 = vpop.f32.mrb[25].mxu0  ;;  %v661_v63 = vpop.f32.mrb[25].mxu1  ;;  %v547_v1 = vadd.f32 %v546_v60, %v3593_v62  ;;  %v660_v0 = vadd.f32 %v659_v49, %v3597_v56 }
 0x1fc   :  { %v550_v42 = vpop.f32.mrb[26].mxu0  ;;  %v663_v59 = vpop.f32.mrb[26].mxu1  ;;  %v549_v53 = vadd.f32 %v548_v61, %v3601_v51  ;;  %v662_v58 = vadd.f32 %v661_v63, %v3605_v52 }
 0x1fd   :  { %v551_v44 = vadd.f32 %v550_v42, %v3593_v62  ;;  %v664_v48 = vadd.f32 %v663_v59, %v3597_v56  ;;  %v552_v45 = vpop.f32.mrb[27].mxu0  ;;  %v665_v47 = vpop.f32.mrb[27].mxu1 }
 0x1fe   :  { %v553_v40 = vadd.f32 %v552_v45, %v3601_v51  ;;  %v666_v57 = vadd.f32 %v665_v47, %v3605_v52 }
 0x1ff   :  { %v702_v50 = vpack.c.bf16 %v551_v44, %v547_v1  ;;  %v704_v41 = vpack.c.bf16 %v664_v48, %v660_v0 }
 0x200   :  { %v703_v43 = vpack.c.bf16 %v553_v40, %v549_v53  ;;  %v705_v46 = vpack.c.bf16 %v666_v57, %v662_v58 }
 0x201   :  { %734 = vst [vmem:[#allocation2 + $0xc0] sm:$0xff] %v702_v50  ;;  %736 = vst [vmem:[#allocation2 + $0xd0] sm:$0xff] %v704_v41  ;;  %v4134_v41 = vsub.s32 0, %v3585_v54 }
 0x202   :  { %735 = vst [vmem:[#allocation2 + $0xc8] sm:$0xff] %v703_v43  ;;  %737 = vst [vmem:[#allocation2 + $0xd8] sm:$0xff] %v705_v46  ;;  %v556_v55 = vpop.f32.mrb[28].mxu0  ;;  %v669_v60 = vpop.f32.mrb[28].mxu1 }
 0x203   :  { %v558_v49 = vpop.f32.mrb[29].mxu0  ;;  %v671_v42 = vpop.f32.mrb[29].mxu1  ;;  %v557_v63 = vadd.f32 %v556_v55, %v3593_v62  ;;  %v670_v45 = vadd.f32 %v669_v60, %v3597_v56  ;;  %v3673_v43 = vrot.slane %v774_v37, %v4134_v41  ;;  %v4136_v60 = vsub.s32 1, %v3585_v54 }
 0x204   :  { %v560_v59 = vpop.f32.mrb[30].mxu0  ;;  %v673_v61 = vpop.f32.mrb[30].mxu1  ;;  %v559_v47 = vadd.f32 %v558_v49, %v3601_v51  ;;  %v672_v53 = vadd.f32 %v671_v42, %v3605_v52 }
 0x205   :  { %v561_v1 = vadd.f32 %v560_v59, %v3593_v62  ;;  %v674_v0 = vadd.f32 %v673_v61, %v3597_v56  ;;  %v562_v44 = vpop.f32.mrb[31].mxu0  ;;  %v675_v48 = vpop.f32.mrb[31].mxu1  ;;  %v4135_v62 = vsub.s32 2, %v3585_v54  ;;  %v3681_v49 = vrot.slane %v774_v37, %v4136_v60 }
 0x206   :  { %v563_v58 = vadd.f32 %v562_v44, %v3601_v51  ;;  %v676_v40 = vadd.f32 %v675_v48, %v3605_v52  ;;  %v4137_v51 = vsub.s32 3, %v3585_v54 }
 0x207   :  { %v706_v57 = vpack.c.bf16 %v561_v1, %v557_v63  ;;  %v708_v50 = vpack.c.bf16 %v674_v0, %v670_v45  ;;  %v3677_v46 = vrot.slane %v774_v37, %v4135_v62 }
 0x208   :  { %v707_v56 = vpack.c.bf16 %v563_v58, %v559_v47  ;;  %v709_v55 = vpack.c.bf16 %v676_v40, %v672_v53  ;;  %v3685_v42 = vrot.slane %v774_v37, %v4137_v51 }
 0x209   :  { %738 = vst [vmem:[#allocation2 + $0xe0] sm:$0xff] %v706_v57  ;;  %740 = vst [vmem:[#allocation2 + $0xf0] sm:$0xff] %v708_v50 }
 0x20a   :  { %739 = vst [vmem:[#allocation2 + $0xe8] sm:$0xff] %v707_v56  ;;  %741 = vst [vmem:[#allocation2 + $0xf8] sm:$0xff] %v709_v55  ;;  %v990_v52 = vpop.f32.mrb[32].mxu0  ;;  %v1103_v59 = vpop.f32.mrb[32].mxu1 }
 0x20b   :  { %v991_v61 = vadd.f32 %v990_v52, %v3673_v43  ;;  %v1104_v63 = vadd.f32 %v1103_v59, %v3677_v46  ;;  %v992_v45 = vpop.f32.mrb[33].mxu0  ;;  %v1105_v1 = vpop.f32.mrb[33].mxu1 }
 0x20c   :  { %v993_v0 = vadd.f32 %v992_v45, %v3681_v49  ;;  %v1106_v44 = vadd.f32 %v1105_v1, %v3685_v42  ;;  %v994_v48 = vpop.f32.mrb[34].mxu0  ;;  %v1107_v54 = vpop.f32.mrb[34].mxu1 }
 0x20d   :  { %v995_v37 = vadd.f32 %v994_v48, %v3673_v43  ;;  %v1108_v47 = vadd.f32 %v1107_v54, %v3677_v46  ;;  %v996_v53 = vpop.f32.mrb[35].mxu0  ;;  %v1109_v58 = vpop.f32.mrb[35].mxu1 }
 0x20e   :  { %v997_v40 = vadd.f32 %v996_v53, %v3681_v49  ;;  %v1110_v57 = vadd.f32 %v1109_v58, %v3685_v42 }
 0x20f   :  { %v1182_v50 = vpack.c.bf16 %v995_v37, %v991_v61  ;;  %v1184_v41 = vpack.c.bf16 %v1108_v47, %v1104_v63 }
 0x210   :  { %v1183_v62 = vpack.c.bf16 %v997_v40, %v993_v0  ;;  %v1185_v56 = vpack.c.bf16 %v1110_v57, %v1106_v44 }
 0x211   :  { %1214 = vst [vmem:[#allocation3] sm:$0xff] %v1182_v50  ;;  %1216 = vst [vmem:[#allocation3 + $0x10] sm:$0xff] %v1184_v41 }
 0x212   :  { %1215 = vst [vmem:[#allocation3 + $0x8] sm:$0xff] %v1183_v62  ;;  %1217 = vst [vmem:[#allocation3 + $0x18] sm:$0xff] %v1185_v56  ;;  %v1000_v55 = vpop.f32.mrb[36].mxu0  ;;  %v1113_v60 = vpop.f32.mrb[36].mxu1 }
 0x213   :  { %v1001_v51 = vadd.f32 %v1000_v55, %v3673_v43  ;;  %v1114_v52 = vadd.f32 %v1113_v60, %v3677_v46  ;;  %v1002_v59 = vpop.f32.mrb[37].mxu0  ;;  %v1115_v45 = vpop.f32.mrb[37].mxu1 }
 0x214   :  { %v1003_v1 = vadd.f32 %v1002_v59, %v3681_v49  ;;  %v1116_v48 = vadd.f32 %v1115_v45, %v3685_v42  ;;  %v1004_v61 = vpop.f32.mrb[38].mxu0  ;;  %v1117_v63 = vpop.f32.mrb[38].mxu1 }
 0x215   :  { %v1005_v0 = vadd.f32 %v1004_v61, %v3673_v43  ;;  %v1118_v44 = vadd.f32 %v1117_v63, %v3677_v46  ;;  %v1006_v54 = vpop.f32.mrb[39].mxu0  ;;  %v1119_v37 = vpop.f32.mrb[39].mxu1 }
 0x216   :  { %v1007_v47 = vadd.f32 %v1006_v54, %v3681_v49  ;;  %v1120_v53 = vadd.f32 %v1119_v37, %v3685_v42 }
 0x217   :  { %v1186_v58 = vpack.c.bf16 %v1005_v0, %v1001_v51  ;;  %v1188_v40 = vpack.c.bf16 %v1118_v44, %v1114_v52 }
 0x218   :  { %v1187_v57 = vpack.c.bf16 %v1007_v47, %v1003_v1  ;;  %v1189_v50 = vpack.c.bf16 %v1120_v53, %v1116_v48 }
 0x219   :  { %1218 = vst [vmem:[#allocation3 + $0x20] sm:$0xff] %v1186_v58  ;;  %1220 = vst [vmem:[#allocation3 + $0x30] sm:$0xff] %v1188_v40 }
 0x21a   :  { %1219 = vst [vmem:[#allocation3 + $0x28] sm:$0xff] %v1187_v57  ;;  %1221 = vst [vmem:[#allocation3 + $0x38] sm:$0xff] %v1189_v50  ;;  %v1010_v41 = vpop.f32.mrb[40].mxu0  ;;  %v1123_v62 = vpop.f32.mrb[40].mxu1 }
 0x21b   :  { %v1011_v56 = vadd.f32 %v1010_v41, %v3673_v43  ;;  %v1124_v55 = vadd.f32 %v1123_v62, %v3677_v46  ;;  %v1012_v60 = vpop.f32.mrb[41].mxu0  ;;  %v1125_v59 = vpop.f32.mrb[41].mxu1 }
 0x21c   :  { %v1013_v45 = vadd.f32 %v1012_v60, %v3681_v49  ;;  %v1126_v61 = vadd.f32 %v1125_v59, %v3685_v42  ;;  %v1014_v51 = vpop.f32.mrb[42].mxu0  ;;  %v1127_v52 = vpop.f32.mrb[42].mxu1 }
 0x21d   :  { %v1015_v1 = vadd.f32 %v1014_v51, %v3673_v43  ;;  %v1128_v48 = vadd.f32 %v1127_v52, %v3677_v46  ;;  %v1016_v63 = vpop.f32.mrb[43].mxu0  ;;  %v1129_v0 = vpop.f32.mrb[43].mxu1 }
 0x21e   :  { %v1017_v44 = vadd.f32 %v1016_v63, %v3681_v49  ;;  %v1130_v54 = vadd.f32 %v1129_v0, %v3685_v42 }
 0x21f   :  { %v1190_v37 = vpack.c.bf16 %v1015_v1, %v1011_v56  ;;  %v1192_v47 = vpack.c.bf16 %v1128_v48, %v1124_v55 }
 0x220   :  { %v1191_v53 = vpack.c.bf16 %v1017_v44, %v1013_v45  ;;  %v1193_v58 = vpack.c.bf16 %v1130_v54, %v1126_v61 }
 0x221   :  { %1222 = vst [vmem:[#allocation3 + $0x40] sm:$0xff] %v1190_v37  ;;  %1224 = vst [vmem:[#allocation3 + $0x50] sm:$0xff] %v1192_v47 }
 0x222   :  { %1223 = vst [vmem:[#allocation3 + $0x48] sm:$0xff] %v1191_v53  ;;  %1225 = vst [vmem:[#allocation3 + $0x58] sm:$0xff] %v1193_v58  ;;  %v1020_v40 = vpop.f32.mrb[44].mxu0  ;;  %v1133_v57 = vpop.f32.mrb[44].mxu1 }
 0x223   :  { %v1021_v50 = vadd.f32 %v1020_v40, %v3673_v43  ;;  %v1134_v41 = vadd.f32 %v1133_v57, %v3677_v46  ;;  %v1022_v62 = vpop.f32.mrb[45].mxu0  ;;  %v1135_v60 = vpop.f32.mrb[45].mxu1 }
 0x224   :  { %v1023_v59 = vadd.f32 %v1022_v62, %v3681_v49  ;;  %v1136_v51 = vadd.f32 %v1135_v60, %v3685_v42  ;;  %v1024_v56 = vpop.f32.mrb[46].mxu0  ;;  %v1137_v55 = vpop.f32.mrb[46].mxu1 }
 0x225   :  { %v1025_v45 = vadd.f32 %v1024_v56, %v3673_v43  ;;  %v1138_v61 = vadd.f32 %v1137_v55, %v3677_v46  ;;  %v1026_v52 = vpop.f32.mrb[47].mxu0  ;;  %v1139_v1 = vpop.f32.mrb[47].mxu1 }
 0x226   :  { %v1027_v48 = vadd.f32 %v1026_v52, %v3681_v49  ;;  %v1140_v63 = vadd.f32 %v1139_v1, %v3685_v42 }
 0x227   :  { %v1194_v0 = vpack.c.bf16 %v1025_v45, %v1021_v50  ;;  %v1196_v44 = vpack.c.bf16 %v1138_v61, %v1134_v41 }
 0x228   :  { %v1195_v54 = vpack.c.bf16 %v1027_v48, %v1023_v59  ;;  %v1197_v37 = vpack.c.bf16 %v1140_v63, %v1136_v51 }
 0x229   :  { %1226 = vst [vmem:[#allocation3 + $0x60] sm:$0xff] %v1194_v0  ;;  %1228 = vst [vmem:[#allocation3 + $0x70] sm:$0xff] %v1196_v44 }
 0x22a   :  { %1227 = vst [vmem:[#allocation3 + $0x68] sm:$0xff] %v1195_v54  ;;  %1229 = vst [vmem:[#allocation3 + $0x78] sm:$0xff] %v1197_v37  ;;  %v1030_v47 = vpop.f32.mrb[48].mxu0  ;;  %v1143_v53 = vpop.f32.mrb[48].mxu1 }
 0x22b   :  { %v1031_v58 = vadd.f32 %v1030_v47, %v3673_v43  ;;  %v1144_v40 = vadd.f32 %v1143_v53, %v3677_v46  ;;  %v1032_v57 = vpop.f32.mrb[49].mxu0  ;;  %v1145_v62 = vpop.f32.mrb[49].mxu1 }
 0x22c   :  { %v1033_v60 = vadd.f32 %v1032_v57, %v3681_v49  ;;  %v1146_v56 = vadd.f32 %v1145_v62, %v3685_v42  ;;  %v1034_v50 = vpop.f32.mrb[50].mxu0  ;;  %v1147_v41 = vpop.f32.mrb[50].mxu1 }
 0x22d   :  { %v1035_v59 = vadd.f32 %v1034_v50, %v3673_v43  ;;  %v1148_v51 = vadd.f32 %v1147_v41, %v3677_v46  ;;  %v1036_v55 = vpop.f32.mrb[51].mxu0  ;;  %v1149_v45 = vpop.f32.mrb[51].mxu1 }
 0x22e   :  { %v1037_v61 = vadd.f32 %v1036_v55, %v3681_v49  ;;  %v1150_v52 = vadd.f32 %v1149_v45, %v3685_v42 }
 0x22f   :  { %v1198_v1 = vpack.c.bf16 %v1035_v59, %v1031_v58  ;;  %v1200_v48 = vpack.c.bf16 %v1148_v51, %v1144_v40 }
 0x230   :  { %v1199_v63 = vpack.c.bf16 %v1037_v61, %v1033_v60  ;;  %v1201_v0 = vpack.c.bf16 %v1150_v52, %v1146_v56 }
 0x231   :  { %1230 = vst [vmem:[#allocation3 + $0x80] sm:$0xff] %v1198_v1  ;;  %1232 = vst [vmem:[#allocation3 + $0x90] sm:$0xff] %v1200_v48 }
 0x232   :  { %1231 = vst [vmem:[#allocation3 + $0x88] sm:$0xff] %v1199_v63  ;;  %1233 = vst [vmem:[#allocation3 + $0x98] sm:$0xff] %v1201_v0  ;;  %v1040_v44 = vpop.f32.mrb[52].mxu0  ;;  %v1153_v54 = vpop.f32.mrb[52].mxu1 }
 0x233   :  { %v1041_v37 = vadd.f32 %v1040_v44, %v3673_v43  ;;  %v1154_v47 = vadd.f32 %v1153_v54, %v3677_v46  ;;  %v1042_v53 = vpop.f32.mrb[53].mxu0  ;;  %v1155_v57 = vpop.f32.mrb[53].mxu1 }
 0x234   :  { %v1043_v62 = vadd.f32 %v1042_v53, %v3681_v49  ;;  %v1156_v50 = vadd.f32 %v1155_v57, %v3685_v42  ;;  %v1044_v58 = vpop.f32.mrb[54].mxu0  ;;  %v1157_v40 = vpop.f32.mrb[54].mxu1 }
 0x235   :  { %v1045_v60 = vadd.f32 %v1044_v58, %v3673_v43  ;;  %v1158_v56 = vadd.f32 %v1157_v40, %v3677_v46  ;;  %v1046_v41 = vpop.f32.mrb[55].mxu0  ;;  %v1159_v59 = vpop.f32.mrb[55].mxu1 }
 0x236   :  { %v1047_v51 = vadd.f32 %v1046_v41, %v3681_v49  ;;  %v1160_v55 = vadd.f32 %v1159_v59, %v3685_v42 }
 0x237   :  { %v1202_v45 = vpack.c.bf16 %v1045_v60, %v1041_v37  ;;  %v1204_v61 = vpack.c.bf16 %v1158_v56, %v1154_v47 }
 0x238   :  { %v1203_v52 = vpack.c.bf16 %v1047_v51, %v1043_v62  ;;  %v1205_v1 = vpack.c.bf16 %v1160_v55, %v1156_v50 }
 0x239   :  { %1234 = vst [vmem:[#allocation3 + $0xa0] sm:$0xff] %v1202_v45  ;;  %1236 = vst [vmem:[#allocation3 + $0xb0] sm:$0xff] %v1204_v61 }
 0x23a   :  { %1235 = vst [vmem:[#allocation3 + $0xa8] sm:$0xff] %v1203_v52  ;;  %1237 = vst [vmem:[#allocation3 + $0xb8] sm:$0xff] %v1205_v1  ;;  %v1050_v48 = vpop.f32.mrb[56].mxu0  ;;  %v1163_v63 = vpop.f32.mrb[56].mxu1 }
 0x23b   :  { %v1051_v0 = vadd.f32 %v1050_v48, %v3673_v43  ;;  %v1164_v44 = vadd.f32 %v1163_v63, %v3677_v46  ;;  %v1052_v54 = vpop.f32.mrb[57].mxu0  ;;  %v1165_v53 = vpop.f32.mrb[57].mxu1 }
 0x23c   :  { %v1053_v57 = vadd.f32 %v1052_v54, %v3681_v49  ;;  %v1166_v58 = vadd.f32 %v1165_v53, %v3685_v42  ;;  %v1054_v37 = vpop.f32.mrb[58].mxu0  ;;  %v1167_v47 = vpop.f32.mrb[58].mxu1 }
 0x23d   :  { %v1055_v62 = vadd.f32 %v1054_v37, %v3673_v43  ;;  %v1168_v50 = vadd.f32 %v1167_v47, %v3677_v46  ;;  %v1056_v40 = vpop.f32.mrb[59].mxu0  ;;  %v1169_v60 = vpop.f32.mrb[59].mxu1 }
 0x23e   :  { %v1057_v56 = vadd.f32 %v1056_v40, %v3681_v49  ;;  %v1170_v41 = vadd.f32 %v1169_v60, %v3685_v42 }
 0x23f   :  { %v1206_v59 = vpack.c.bf16 %v1055_v62, %v1051_v0  ;;  %v1208_v51 = vpack.c.bf16 %v1168_v50, %v1164_v44 }
 0x240   :  { %v1207_v55 = vpack.c.bf16 %v1057_v56, %v1053_v57  ;;  %v1209_v45 = vpack.c.bf16 %v1170_v41, %v1166_v58 }
 0x241   :  { %1238 = vst [vmem:[#allocation3 + $0xc0] sm:$0xff] %v1206_v59  ;;  %1240 = vst [vmem:[#allocation3 + $0xd0] sm:$0xff] %v1208_v51 }
 0x242   :  { %1239 = vst [vmem:[#allocation3 + $0xc8] sm:$0xff] %v1207_v55  ;;  %1241 = vst [vmem:[#allocation3 + $0xd8] sm:$0xff] %v1209_v45  ;;  %v1060_v61 = vpop.f32.mrb[60].mxu0  ;;  %v1173_v52 = vpop.f32.mrb[60].mxu1 }
 0x243   :  { %v1061_v1 = vadd.f32 %v1060_v61, %v3673_v43  ;;  %v1174_v48 = vadd.f32 %v1173_v52, %v3677_v46  ;;  %v1062_v63 = vpop.f32.mrb[61].mxu0  ;;  %v1175_v54 = vpop.f32.mrb[61].mxu1 }
 0x244   :  { %v1063_v53 = vadd.f32 %v1062_v63, %v3681_v49  ;;  %v1176_v37 = vadd.f32 %v1175_v54, %v3685_v42  ;;  %v1064_v0 = vpop.f32.mrb[62].mxu0  ;;  %v1177_v44 = vpop.f32.mrb[62].mxu1  ;;  %1321 = sbr.rel (!%p172_p10) target bundleno = 592 (0x250), region = 85 }
 0x245   :  { %v1065_v57 = vadd.f32 %v1064_v0, %v3673_v43  ;;  %v1178_v58 = vadd.f32 %v1177_v44, %v3677_v46  ;;  %v1066_v47 = vpop.f32.mrb[63].mxu0  ;;  %v1179_v62 = vpop.f32.mrb[63].mxu1  ;;  %v3187_v43 = vmov (%p172_p10), 0  }
 0x246   :  { %v1067_v50 = vadd.f32 %v1066_v47, %v3681_v49  ;;  %v1180_v40 = vadd.f32 %v1179_v62, %v3685_v42  ;;  %1322 = vst [vmem:[#allocation4] sm:$0xff] (%p172_p10), %v3187_v43  ;;  %1323 = vst [vmem:[#allocation4 + $0x8] sm:$0xff] (%p172_p10), %v3187_v43 }
 0x247   :  { %v1210_v60 = vpack.c.bf16 %v1065_v57, %v1061_v1  ;;  %v1212_v56 = vpack.c.bf16 %v1178_v58, %v1174_v48  ;;  %1324 = vst [vmem:[#allocation4 + $0x10] sm:$0xff] (%p172_p10), %v3187_v43  ;;  %1325 = vst [vmem:[#allocation4 + $0x18] sm:$0xff] (%p172_p10), %v3187_v43 }
 0x248   :  { %v1211_v41 = vpack.c.bf16 %v1067_v50, %v1063_v53  ;;  %v1213_v59 = vpack.c.bf16 %v1180_v40, %v1176_v37  ;;  %1326 = vst [vmem:[#allocation4 + $0x20] sm:$0xff] (%p172_p10), %v3187_v43  ;;  %1327 = vst [vmem:[#allocation4 + $0x28] sm:$0xff] (%p172_p10), %v3187_v43 }
 0x249   :  { %1242 = vst [vmem:[#allocation3 + $0xe0] sm:$0xff] %v1210_v60  ;;  %1244 = vst [vmem:[#allocation3 + $0xf0] sm:$0xff] %v1212_v56 }
 0x24a   :  { %1243 = vst [vmem:[#allocation3 + $0xe8] sm:$0xff] %v1211_v41  ;;  %1245 = vst [vmem:[#allocation3 + $0xf8] sm:$0xff] %v1213_v59 }
 0x24b   :  { %1328 = vst [vmem:[#allocation4 + $0x30] sm:$0xff] %v3187_v43  ;;  %1329 = vst [vmem:[#allocation4 + $0x38] sm:$0xff] %v3187_v43 }
 0x24c   :  { %1330 = vst [vmem:[#allocation5] sm:$0xff] %v3187_v43  ;;  %1331 = vst [vmem:[#allocation5 + $0x8] sm:$0xff] %v3187_v43 }
 0x24d   :  { %1332 = vst [vmem:[#allocation5 + $0x10] sm:$0xff] %v3187_v43  ;;  %1333 = vst [vmem:[#allocation5 + $0x18] sm:$0xff] %v3187_v43 }
 0x24e   :  { %1334 = vst [vmem:[#allocation5 + $0x20] sm:$0xff] %v3187_v43  ;;  %1335 = vst [vmem:[#allocation5 + $0x28] sm:$0xff] %v3187_v43 }
 0x24f   :  { %1336 = vst [vmem:[#allocation5 + $0x30] sm:$0xff] %v3187_v43  ;;  %1337 = vst [vmem:[#allocation5 + $0x38] sm:$0xff] %v3187_v43 }
 0x250 PF:  { %p2597_p11 = scmp.le.s32.totalorder %s3992_s0, 0 }
 0x251   :  { %s3758_s4 = smov (!%p2597_p11), 0  }
 0x252   :  { %2429 = sbr.rel (%p2597_p11) target bundleno = 931 (0x3a3), region = 109 }
 0x259 LB: > { %v4138_v29 = vld [vmem:[#allocation64_spill] sm:$0xff]  ;;  %v4139_v28 = vld [vmem:[#allocation63_spill] sm:$0xff]  ;;  %v4140_v27 = vld [vmem:[#allocation62_spill] sm:$0xff]  ;;  %v3188_v63 = vmov 0   ;;  %s2508_s0 = sadd.s32 4294967295, %s3403_s15  ;;  %v1966_v40 = vstv %s3167_s4  ;;  %s2600_s18 = sshll.u32 %s3167_s4, 5  ;;  %s3167_s4 = sphi %s3758_s4, %s1341_s4  }
 0x25a   : > { %v4141_v26 = vld [vmem:[#allocation61_spill] sm:$0xff]  ;;  %v4142_v25 = vld [vmem:[#allocation60_spill] sm:$0xff]  ;;  %v4143_v24 = vld [vmem:[#allocation59_spill] sm:$0xff]  ;;  %1562 = vmatprep.mubr.bf16.mxu0 %v3188_v63  ;;  %1605 = vmatprep.mubr.bf16.mxu1 %v3188_v63  ;;  %s3805_s7 = ssub.s32 %s2508_s0, %s3167_s4  ;;  %s1356_s24 = scalar_lea.vmem [#allocation2], %s2600_s18 }
 0x25b   : > { %v4144_v23 = vld [vmem:[#allocation58_spill] sm:$0xff]  ;;  %v4145_v22 = vld [vmem:[#allocation57_spill] sm:$0xff]  ;;  %v4146_v21 = vld [vmem:[#allocation56_spill] sm:$0xff]  ;;  %2847 = vset.pattern.permute.xlu0 %v3188_v63  ;;  %2848 = vset.pattern.permute.xlu1 %v3188_v63  ;;  %v2532_v60 = vcombine.high %v4143_v24, %v4141_v26  ;;  %v2534_v56 = vcombine.high %v4142_v25, %v4140_v27  ;;  %v1969_v41 = vstv %s3805_s7  ;;  %v2531_v59 = vcombine.low %v4143_v24, %v4141_v26  ;;  %s2601_s20 = sshll.u32 %s3805_s7, 5  ;;  %s2577_s1 = sshll.u32 %s3167_s4, 3 }
 0x25c   : > { %v4147_v20 = vld [vmem:[#allocation55_spill] sm:$0xff]  ;;  %v4148_v19 = vld [vmem:[#allocation54_spill] sm:$0xff]  ;;  %v4149_v18 = vld [vmem:[#allocation53_spill] sm:$0xff]  ;;  %v2530_v47 = vcombine.high %v4146_v21, %v4144_v23  ;;  %v2529_v50 = vcombine.low %v4146_v21, %v4144_v23  ;;  %v2533_v43 = vcombine.low %v4142_v25, %v4140_v27  ;;  %s1626_s21 = scalar_lea.vmem [#allocation3], %s2601_s20  ;;  %s2012_s2 = scalar_lea.vmem [#allocation4], %s2577_s1 }
 0x25d   : > { %v4150_v17 = vld [vmem:[#allocation52_spill] sm:$0xff]  ;;  %v4151_v16 = vld [vmem:[#allocation51_spill] sm:$0xff]  ;;  %v4152_v15 = vld [vmem:[#allocation50_spill] sm:$0xff]  ;;  %v2528_v58 = vcombine.high %v4147_v20, %v4145_v22  ;;  %v2527_v62 = vcombine.low %v4147_v20, %v4145_v22  ;;  %s2578_s23 = sshll.u32 %s3805_s7, 3  ;;  %s1341_s4 = sadd.s32 1, %s3167_s4  }
 0x25e   : > { %v4153_v14 = vld [vmem:[#allocation49_spill] sm:$0xff]  ;;  %v4154_v13 = vld [vmem:[#allocation48_spill] sm:$0xff]  ;;  %v4155_v12 = vld [vmem:[#allocation47_spill] sm:$0xff]  ;;  %v2524_v37 = vcombine.high %v4151_v16, %v4149_v18  ;;  %v2526_v0 = vcombine.high %v4150_v17, %v4148_v19  ;;  %v2523_v44 = vcombine.low %v4151_v16, %v4149_v18  ;;  %v2525_v57 = vcombine.low %v4150_v17, %v4148_v19  ;;  %s2018_s25 = scalar_lea.vmem [#allocation5], %s2578_s23  ;;  %p1340_p12 = scmp.ge.s32.totalorder %s1341_s4, %s3403_s15 }
 0x25f   : > { %v4156_v11 = vld [vmem:[#allocation46_spill] sm:$0xff]  ;;  %v4157_v10 = vld [vmem:[#allocation45_spill] sm:$0xff]  ;;  %v4158_v9 = vld [vmem:[#allocation44_spill] sm:$0xff]  ;;  %v2520_v1 = vcombine.high %v4155_v12, %v4153_v14  ;;  %v2522_v48 = vcombine.high %v4154_v13, %v4152_v15  ;;  %v2519_v54 = vcombine.low %v4155_v12, %v4153_v14  ;;  %v2521_v53 = vcombine.low %v4154_v13, %v4152_v15 }
 0x260   : > { %v4159_v8 = vld [vmem:[#allocation43_spill] sm:$0xff]  ;;  %v4160_v7 = vld [vmem:[#allocation42_spill] sm:$0xff]  ;;  %v4161_v6 = vld [vmem:[#allocation41_spill] sm:$0xff]  ;;  %v2518_v45 = vcombine.high %v4158_v9, %v4156_v11  ;;  %v2517_v52 = vcombine.low %v4158_v9, %v4156_v11 }
 0x261   : > { %v4162_v5 = vld [vmem:[#allocation40_spill] sm:$0xff]  ;;  %v4163_v4 = vld [vmem:[#allocation39_spill] sm:$0xff]  ;;  %v4164_v3 = vld [vmem:[#allocation38_spill] sm:$0xff]  ;;  %v2516_v42 = vcombine.high %v4159_v8, %v4157_v10  ;;  %v2515_v61 = vcombine.low %v4159_v8, %v4157_v10 }
 0x262   : > { %v4165_v2 = vld [vmem:[#allocation37_spill] sm:$0xff]  ;;  %v2512_v46 = vcombine.high %v4163_v4, %v4161_v6  ;;  %v2511_v49 = vcombine.low %v4163_v4, %v4161_v6  ;;  %v2514_v51 = vcombine.high %v4162_v5, %v4160_v7  ;;  %v2513_v55 = vcombine.low %v4162_v5, %v4160_v7  ;;  %v4186_v4 = vld [vmem:[#allocation83_spill] sm:$0xff]  ;;  %v4188_v6 = vld [vmem:[#allocation86_spill] sm:$0xff] }
 0x263   : > { %vm1967_vm0 = vcmp.lt.s32.totalorder %v1966_v40, %v4165_v2  ;;  %vm1968_vm1 = vcmp.lt.s32.totalorder %v1966_v40, %v4164_v3  ;;  %vm1970_vm2 = vcmp.lt.s32.totalorder %v1969_v41, %v4165_v2  ;;  %vm1971_vm3 = vcmp.lt.s32.totalorder %v1969_v41, %v4164_v3  ;;  %v4167_v40 = vld [vmem:[#allocation68_spill] sm:$0xff]  ;;  %v4169_v41 = vld [vmem:[#allocation69_spill] sm:$0xff]  ;;  %v4190_v8 = vld [vmem:[#allocation87_spill] sm:$0xff] }
 0x264   : > { %1530 = vmatprep.subr.bf16.mxu0 %v2512_v46  ;;  %1573 = vmatprep.subr.bf16.mxu1 %v2514_v51  ;;  %v1972_v46 = vsel %vm1967_vm0, 1, %v3188_v63  ;;  %v1990_v51 = vsel %vm1970_vm2, 1, %v3188_v63  ;;  %v4194_v10 = vld [vmem:[#allocation91_spill] sm:$0xff]  ;;  %v3915_v11 = vld [vmem:[#allocation8] sm:$0xff]  ;;  %v1360_v16 = vld [vmem:[%s1356_s24 + $0x18] sm:$0xff] }
 0x265   : > { %1531 = vmatpush1.bf16.msra.mxu0 %v2511_v49  ;;  %1574 = vmatpush1.bf16.msra.mxu1 %v2513_v55  ;;  %v2536_v49 = vcombine.high %v4139_v28, %v3461_v30  ;;  %v1973_v55 = vsel %vm1968_vm1, 1, %v3188_v63 }
 0x266   : > { %1532 = vmatprep.subr.bf16.mxu0 %v2516_v42  ;;  %1575 = vmatprep.subr.bf16.mxu1 %v2518_v45  ;;  %v2538_v42 = vcombine.high %v4138_v29, %v3463_v31  ;;  %v1991_v45 = vsel %vm1971_vm3, 1, %v3188_v63 }
 0x267   : > { %1975 = vperm.xlu0 %2847, %v1972_v46   ;;  %1993 = vperm.xlu1 %2848, %v1990_v51   ;;  %v4172_v51 = vld [vmem:[#allocation70_spill] sm:$0xff] }
 0x269   : > { %1533 = vmatpush1.bf16.msra.mxu0 %v2515_v61  ;;  %1576 = vmatpush1.bf16.msra.mxu1 %v2517_v52  ;;  %v2535_v61 = vcombine.low %v4139_v28, %v3461_v30  ;;  %v2537_v52 = vcombine.low %v4138_v29, %v3463_v31 }
 0x26a   : > { %1534 = vmatprep.subr.bf16.mxu0 %v2520_v1  ;;  %1577 = vmatprep.subr.bf16.mxu1 %v2522_v48  ;;  %v2540_v1 = vcombine.high %v3465_v32, %v3469_v34  ;;  %v2542_v48 = vcombine.high %v3467_v33, %v3471_v35 }
 0x26b   : > { %1978 = vperm.xlu0 %2847, %v1973_v55   ;;  %1996 = vperm.xlu1 %2848, %v1991_v45   ;;  %v4173_v45 = vld [vmem:[#allocation73_spill] sm:$0xff] }
 0x26d   : > { %1535 = vmatpush1.bf16.msra.mxu0 %v2519_v54  ;;  %1578 = vmatpush1.bf16.msra.mxu1 %v2521_v53  ;;  %v2539_v54 = vcombine.low %v3465_v32, %v3469_v34  ;;  %v3843_v53 = vld [vmem:[#allocation6] sm:$0xff] }
 0x26e   : > { %1536 = vmatprep.subr.bf16.mxu0 %v2524_v37  ;;  %1579 = vmatprep.subr.bf16.mxu1 %v2526_v0  ;;  %v3845_v37 = vld [vmem:[#allocation6 + $0x8] sm:$0xff]  ;;  %v2541_v0 = vcombine.low %v3467_v33, %v3471_v35 }
 0x271   : > { %1537 = vmatpush1.bf16.msra.mxu0 %v2523_v44  ;;  %1580 = vmatpush1.bf16.msra.mxu1 %v2525_v57  ;;  %v2546_v44 = vcombine.high %v3473_v36, %v3477_v38  ;;  %v4166_v57 = vld [vmem:[#allocation65_spill] sm:$0xff] }
 0x272   : > { %1538 = vmatprep.subr.bf16.mxu0 %v2528_v58  ;;  %1581 = vmatprep.subr.bf16.mxu1 %v2530_v47  ;;  %v2548_v58 = vcombine.high %v4166_v57, %v3479_v39  ;;  %v1369_v47 = vpack.c.bf16 %v3845_v37, %v3843_v53 }
 0x275   : > { %1539 = vmatpush1.bf16.msra.mxu0 %v2527_v62  ;;  %1582 = vmatpush1.bf16.msra.mxu1 %v2529_v50  ;;  %v2545_v62 = vcombine.low %v3473_v36, %v3477_v38  ;;  %v2547_v50 = vcombine.low %v4166_v57, %v3479_v39 }
 0x276   : > { %1540 = vmatprep.subr.bf16.mxu0 %v2532_v60  ;;  %1583 = vmatprep.subr.bf16.mxu1 %v2534_v56  ;;  %v4168_v60 = vld [vmem:[#allocation66_spill] sm:$0xff] }
 0x277   : > { %v2550_v56 = vcombine.high %v4168_v60, %v4167_v40  ;;  %v2549_v46 = vcombine.low %v4168_v60, %v4167_v40 }
 0x279   : > { %1541 = vmatpush1.bf16.msra.mxu0 %v2531_v59  ;;  %1584 = vmatpush1.bf16.msra.mxu1 %v2533_v43  ;;  %v4170_v59 = vld [vmem:[#allocation67_spill] sm:$0xff] }
 0x27a   : > { %1542 = vmatprep.subr.bf16.mxu0 %v2536_v49  ;;  %1585 = vmatprep.subr.bf16.mxu1 %v2538_v42  ;;  %v2552_v43 = vcombine.high %v4170_v59, %v4169_v41  ;;  %v2551_v49 = vcombine.low %v4170_v59, %v4169_v41  ;;  %v4171_v42 = vld [vmem:[#allocation72_spill] sm:$0xff] }
 0x27b   : > { %v2554_v55 = vcombine.high %v4172_v51, %v4171_v42 }
 0x27d   : > { %1543 = vmatpush1.bf16.msra.mxu0 %v2535_v61  ;;  %1586 = vmatpush1.bf16.msra.mxu1 %v2537_v52  ;;  %v4174_v61 = vld [vmem:[#allocation71_spill] sm:$0xff] }
 0x27e   : > { %1544 = vmatprep.subr.bf16.mxu0 %v2540_v1  ;;  %1587 = vmatprep.subr.bf16.mxu1 %v2542_v48  ;;  %v2556_v52 = vcombine.high %v4174_v61, %v4173_v45  ;;  %v2553_v1 = vcombine.low %v4172_v51, %v4171_v42  ;;  %v2555_v48 = vcombine.low %v4174_v61, %v4173_v45 }
 0x281   : > { %1545 = vmatpush1.bf16.msra.mxu0 %v2539_v54  ;;  %1588 = vmatpush1.bf16.msra.mxu1 %v2541_v0  ;;  %v4175_v54 = vld [vmem:[#allocation76_spill] sm:$0xff]  ;;  %v4176_v0 = vld [vmem:[#allocation74_spill] sm:$0xff] }
 0x282   : > { %1800 = vmatprep.subr.bf16.mxu0 %v2546_v44  ;;  %1843 = vmatprep.subr.bf16.mxu1 %v2548_v58  ;;  %v2558_v44 = vcombine.high %v4176_v0, %v4175_v54  ;;  %v4177_v58 = vld [vmem:[#allocation77_spill] sm:$0xff] }
 0x284   : > { %1563 = vmatmul.mubr.bf16.vlgmr.msra.gmra.mrb[0].mxu0 %v1369_v47  ;;  %1606 = vmatmul.mubr.bf16.vlgmr.msra.gmra.mrb[0].mxu1 %v1369_v47  ;;  %v4178_v47 = vld [vmem:[#allocation75_spill] sm:$0xff] }
 0x285   : > { %1801 = vmatpush1.bf16.msra.mxu0 %v2545_v62  ;;  %1844 = vmatpush1.bf16.msra.mxu1 %v2547_v50  ;;  %v2560_v62 = vcombine.high %v4178_v47, %v4177_v58  ;;  %v2559_v50 = vcombine.low %v4178_v47, %v4177_v58 }
 0x286   : > { %1802 = vmatprep.subr.bf16.mxu0 %v2550_v56  ;;  %1845 = vmatprep.subr.bf16.mxu1 %v2552_v43  ;;  %v4179_v56 = vld [vmem:[#allocation80_spill] sm:$0xff]  ;;  %v4180_v43 = vld [vmem:[#allocation78_spill] sm:$0xff] }
 0x287   : > { %1832 = vmatprep.mubr.bf16.mxu0 %v3188_v63  ;;  %1875 = vmatprep.mubr.bf16.mxu1 %v3188_v63  ;;  %v2557_v63 = vcombine.low %v4176_v0, %v4175_v54  ;;  %v4184_v0 = vld [vmem:[#allocation82_spill] sm:$0xff] }
 0x289   : > { %1803 = vmatpush1.bf16.msra.mxu0 %v2549_v46  ;;  %1846 = vmatpush1.bf16.msra.mxu1 %v2551_v49  ;;  %v2562_v46 = vcombine.high %v4180_v43, %v4179_v56  ;;  %v4181_v49 = vld [vmem:[#allocation81_spill] sm:$0xff] }
 0x28a   : > { %1804 = vmatprep.subr.bf16.mxu0 %v2554_v55  ;;  %1847 = vmatprep.subr.bf16.mxu1 %v2556_v52  ;;  %v4182_v55 = vld [vmem:[#allocation79_spill] sm:$0xff]  ;;  %v2561_v52 = vcombine.low %v4180_v43, %v4179_v56 }
 0x28b   : > { %v2564_v2 = vcombine.high %v4182_v55, %v4181_v49 }
 0x28d   : > { %1805 = vmatpush1.bf16.msra.mxu0 %v2553_v1  ;;  %1848 = vmatpush1.bf16.msra.mxu1 %v2555_v48  ;;  %v2563_v1 = vcombine.low %v4182_v55, %v4181_v49  ;;  %v4183_v48 = vld [vmem:[#allocation84_spill] sm:$0xff] }
 0x28e   : > { %1806 = vmatprep.subr.bf16.mxu0 %v2558_v44  ;;  %1849 = vmatprep.subr.bf16.mxu1 %v2560_v62  ;;  %v2566_v3 = vcombine.high %v4184_v0, %v4183_v48  ;;  %v4185_v44 = vld [vmem:[#allocation85_spill] sm:$0xff]  ;;  %v2565_v62 = vcombine.low %v4184_v0, %v4183_v48  ;;  %v4192_v0 = vld [vmem:[#allocation90_spill] sm:$0xff] }
 0x28f   : > { %v2568_v5 = vcombine.high %v4186_v4, %v4185_v44 }
 0x291   : > { %1807 = vmatpush1.bf16.msra.mxu0 %v2557_v63  ;;  %1850 = vmatpush1.bf16.msra.mxu1 %v2559_v50  ;;  %v2567_v63 = vcombine.low %v4186_v4, %v4185_v44  ;;  %v4187_v50 = vld [vmem:[#allocation88_spill] sm:$0xff] }
 0x292   : > { %1808 = vmatprep.subr.bf16.mxu0 %v2562_v46  ;;  %1851 = vmatprep.subr.bf16.mxu1 %v2564_v2  ;;  %v2570_v7 = vcombine.high %v4188_v6, %v4187_v50  ;;  %v4189_v46 = vld [vmem:[#allocation89_spill] sm:$0xff]  ;;  %v2569_v2 = vcombine.low %v4188_v6, %v4187_v50 }
 0x293   : > { %v2572_v9 = vcombine.high %v4190_v8, %v4189_v46 }
 0x295   : > { %1809 = vmatpush1.bf16.msra.mxu0 %v2561_v52  ;;  %1852 = vmatpush1.bf16.msra.mxu1 %v2563_v1  ;;  %v2571_v52 = vcombine.low %v4190_v8, %v4189_v46  ;;  %v4191_v1 = vld [vmem:[#allocation92_spill] sm:$0xff] }
 0x296   : > { %1810 = vmatprep.subr.bf16.mxu0 %v2566_v3  ;;  %1853 = vmatprep.subr.bf16.mxu1 %v2568_v5  ;;  %v2574_v4 = vcombine.high %v4192_v0, %v4191_v1  ;;  %v4193_v3 = vld [vmem:[#allocation93_spill] sm:$0xff] }
 0x297   : > { %v2576_v5 = vcombine.high %v4194_v10, %v4193_v3 }
 0x299   : > { %1811 = vmatpush1.bf16.msra.mxu0 %v2565_v62  ;;  %1854 = vmatpush1.bf16.msra.mxu1 %v2567_v63  ;;  %v2573_v62 = vcombine.low %v4192_v0, %v4191_v1  ;;  %v3917_v63 = vld [vmem:[#allocation8 + $0x8] sm:$0xff] }
 0x29a   : > { %1812 = vmatprep.subr.bf16.mxu0 %v2570_v7  ;;  %1855 = vmatprep.subr.bf16.mxu1 %v2572_v9  ;;  %v2575_v7 = vcombine.low %v4194_v10, %v4193_v3  ;;  %v1639_v9 = vpack.c.bf16 %v3917_v63, %v3915_v11  ;;  %v1358_v0 = vld [vmem:[%s1356_s24 + $0x8] sm:$0xff] }
 0x29b   : > { %v1362_v8 = vunpack.c.l.bf16 %v1358_v0  ;;  %v1366_v3 = vunpack.c.h.bf16 %v1358_v0  ;;  %v1364_v0 = vunpack.c.l.bf16 %v1360_v16 }
 0x29d   : > { %1813 = vmatpush1.bf16.msra.mxu0 %v2569_v2  ;;  %1856 = vmatpush1.bf16.msra.mxu1 %v2571_v52  ;;  %v1357_v2 = vld [vmem:[%s1356_s24] sm:$0xff]  ;;  %v1359_v52 = vld [vmem:[%s1356_s24 + $0x10] sm:$0xff] }
 0x29e   : > { %1814 = vmatprep.subr.bf16.mxu0 %v2574_v4  ;;  %1857 = vmatprep.subr.bf16.mxu1 %v2576_v5  ;;  %v1361_v1 = vunpack.c.l.bf16 %v1357_v2  ;;  %v1363_v6 = vunpack.c.l.bf16 %v1359_v52  ;;  %v1365_v12 = vunpack.c.h.bf16 %v1357_v2 }
 0x2a1   : > { %1815 = vmatpush1.bf16.msra.mxu0 %v2573_v62  ;;  %1858 = vmatpush1.bf16.msra.mxu1 %v2575_v7 }
 0x2a4   : > { %1833 = vmatmul.mubr.bf16.vlgmr.msra.gmra.mrb[4].mxu0 %v1639_v9  ;;  %1876 = vmatmul.mubr.bf16.vlgmr.msra.gmra.mrb[4].mxu1 %v1639_v9  ;;  %v1367_v9 = vunpack.c.h.bf16 %v1359_v52 }
 0x357   : > { %v1564_v13 = vpop.f32.mrb[0].mxu0  ;;  %v1607_v4 = vpop.f32.mrb[0].mxu1 }
 0x358   : > { %v1616_v5 = vadd.f32 %v1564_v13, %v1361_v1  ;;  %v1566_v10 = vpop.f32.mrb[1].mxu0  ;;  %v1618_v14 = vadd.f32 %v1607_v4, %v1363_v6  ;;  %v1609_v15 = vpop.f32.mrb[1].mxu1  ;;  %v1368_v6 = vunpack.c.h.bf16 %v1360_v16 }
 0x359   : > { %v1617_v62 = vadd.f32 %v1566_v10, %v1362_v8  ;;  %v1568_v7 = vpop.f32.mrb[2].mxu0  ;;  %v1611_v17 = vpop.f32.mrb[2].mxu1  ;;  %v1619_v8 = vadd.f32 %v1609_v15, %v1364_v0 }
 0x35a   : > { %v1894_v18 = vmul.f32 0.5, %v1616_v5  ;;  %v1620_v19 = vadd.f32 %v1568_v7, %v1365_v12  ;;  %v1570_v20 = vpop.f32.mrb[3].mxu0  ;;  %v1613_v21 = vpop.f32.mrb[3].mxu1  ;;  %2849 = vtanh.f32 %v1618_v14  ;;  %v1622_v1 = vadd.f32 %v1611_v17, %v1367_v9 }
 0x35b   : > { %v1902_v22 = vmul.f32 0.5, %v1617_v62  ;;  %v1621_v23 = vadd.f32 %v1570_v20, %v1366_v3  ;;  %v1623_v10 = vadd.f32 %v1613_v21, %v1368_v6  ;;  %v1912_v52 = vmul.f32 0.5, %v1619_v8  ;;  %v3924_v62 = vpop.permute.xlu0 %1975 }
 0x35c   : > { %2851 = vtanh.f32 %v1894_v18  ;;  %v1895_v2 = vmul.f32 0.5, %v1620_v19  ;;  %vm1980_vm4 = vcmp.eq.s32.totalorder %v3924_v62, 1 }
 0x35d   : > { %2853 = vtanh.f32 %v1902_v22  ;;  %v1903_v13 = vmul.f32 0.5, %v1621_v23  ;;  %v1913_v12 = vmul.f32 0.5, %v1623_v10  ;;  %v1348_v23 = vld [vmem:[#allocation7] sm:$0xff] }
 0x35e   : > { %2855 = vtanh.f32 %v1895_v2  ;;  %v1349_v2 = vld [vmem:[#allocation7 + $0x8] sm:$0xff] }
 0x35f   : > { %2857 = vtanh.f32 %v1903_v13 }
 0x360   : > { %2859 = vtanh.f32 %v1622_v1  ;;  %v3927_v1 = vpop.permute.xlu0 %1978 }
 0x361   : > { %2861 = vtanh.f32 %v1912_v52  ;;  %vm1981_vm5 = vcmp.eq.s32.totalorder %v3927_v1, 1 }
 0x362   : > { %2863 = vtanh.f32 %v1913_v12 }
 0x364   : > { %v2850_v4 = vpop.eup %2849 }
 0x366   : > { %v2852_v5 = vpop.eup %2851 }
 0x367   : > { %v2854_v14 = vpop.eup %2853  ;;  %v1898_v18 = vmul.f32 0.5, %v2852_v5  ;;  %v1629_v5 = vld [vmem:[%s1626_s21 + $0x10] sm:$0xff] }
 0x368   : > { %v2856_v19 = vpop.eup %2855  ;;  %v1906_v20 = vmul.f32 0.5, %v2854_v14  ;;  %v1637_v24 = vunpack.c.h.bf16 %v1629_v5 }
 0x369   : > { %v2858_v22 = vpop.eup %2857  ;;  %v1900_v17 = vadd.f32 0.5, %v1898_v18  ;;  %v1899_v16 = vmul.f32 0.5, %v2856_v19  ;;  %v1628_v19 = vld [vmem:[%s1626_s21 + $0x8] sm:$0xff] }
 0x36a   : > { %v1908_v15 = vadd.f32 0.5, %v1906_v20  ;;  %v1907_v3 = vmul.f32 0.5, %v2858_v22  ;;  %v2860_v21 = vpop.eup %2859 }
 0x36b   : > { %v1901_v7 = vadd.f32 0.5, %v1899_v16  ;;  %v1922_v9 = vmul.f32 %v2850_v4, %v1900_v17  ;;  %v1627_v4 = vld [vmem:[%s1626_s21] sm:$0xff]  ;;  %v2862_v14 = vpop.eup %2861  ;;  %v1633_v17 = vunpack.c.l.bf16 %v1629_v5 }
 0x36c   : > { %v1909_v0 = vadd.f32 0.5, %v1907_v3  ;;  %v1920_v13 = vmul.f32 %v1908_v15, %v1348_v23  ;;  %v2864_v20 = vpop.eup %2863  ;;  %v1631_v22 = vunpack.c.l.bf16 %v1627_v4  ;;  %v1916_v16 = vmul.f32 0.5, %v2862_v14 }
 0x36d   : > { %v1923_v6 = vmul.f32 %v2860_v21, %v1901_v7  ;;  %v1632_v15 = vunpack.c.l.bf16 %v1628_v19  ;;  %v1917_v3 = vmul.f32 0.5, %v2864_v20  ;;  %v1635_v21 = vunpack.c.h.bf16 %v1627_v4 }
 0x36e   : > { %v1924_v8 = vadd.f32 %v1922_v9, %v1920_v13  ;;  %v1921_v10 = vmul.f32 %v1909_v0, %v1349_v2  ;;  %v1636_v7 = vunpack.c.h.bf16 %v1628_v19 }
 0x36f   : > { %v1919_v26 = vadd.f32 0.5, %v1917_v3 }
 0x370   : > { %2865 = vtanh.f32 %v1924_v8  ;;  %v1986_v52 = vsel %vm1980_vm4, %v1924_v8, %v1348_v23  ;;  %v1925_v12 = vadd.f32 %v1923_v6, %v1921_v10  ;;  %v1918_v10 = vadd.f32 0.5, %v1916_v16 }
 0x371   : > { %1988 = vst [vmem:[#allocation7] sm:$0xff] %v1986_v52 }
 0x372   : > { %2867 = vtanh.f32 %v1925_v12  ;;  %v1987_v18 = vsel %vm1981_vm5, %v1925_v12, %v1349_v2  ;;  %v1630_v12 = vld [vmem:[%s1626_s21 + $0x18] sm:$0xff] }
 0x373   : > { %1989 = vst [vmem:[#allocation7 + $0x8] sm:$0xff] %v1987_v18  ;;  %v1634_v16 = vunpack.c.l.bf16 %v1630_v12 }
 0x377   : > { %v1834_v23 = vpop.f32.mrb[4].mxu0  ;;  %v1877_v9 = vpop.f32.mrb[4].mxu1 }
 0x378   : > { %v1886_v0 = vadd.f32 %v1834_v23, %v1631_v22  ;;  %v1836_v13 = vpop.f32.mrb[5].mxu0  ;;  %v1888_v6 = vadd.f32 %v1877_v9, %v1633_v17  ;;  %v1879_v8 = vpop.f32.mrb[5].mxu1 }
 0x379   : > { %v1887_v52 = vadd.f32 %v1836_v13, %v1632_v15  ;;  %v1838_v2 = vpop.f32.mrb[6].mxu0  ;;  %v1881_v18 = vpop.f32.mrb[6].mxu1 }
 0x37a   : > { %v2866_v25 = vpop.eup %2865  ;;  %v1930_v14 = vmul.f32 0.5, %v1886_v0  ;;  %v1890_v27 = vadd.f32 %v1838_v2, %v1635_v21  ;;  %v1840_v20 = vpop.f32.mrb[7].mxu0  ;;  %2869 = vtanh.f32 %v1888_v6  ;;  %v1892_v3 = vadd.f32 %v1881_v18, %v1637_v24  ;;  %v1352_v2 = vld [vmem:[#allocation9] sm:$0xff] }
 0x37b   : > { %v1883_v4 = vpop.f32.mrb[7].mxu1  ;;  %v1928_v28 = vmul.f32 %v2866_v25, %v1918_v10  ;;  %v1938_v19 = vmul.f32 0.5, %v1887_v52  ;;  %v1891_v29 = vadd.f32 %v1840_v20, %v1636_v7  ;;  %v1638_v7 = vunpack.c.h.bf16 %v1630_v12  ;;  %v1994_v6 = vpop.permute.xlu1 %1993 }
 0x37c   : > { %v2868_v22 = vpop.eup %2867  ;;  %2871 = vtanh.f32 %v1930_v14  ;;  %v1931_v17 = vmul.f32 0.5, %v1890_v27  ;;  %vm1998_vm6 = vcmp.eq.s32.totalorder %v1994_v6, 1 }
 0x37d   : > { %v1982_v5 = vsel %vm1980_vm4, %v1928_v28, %v3843_v53  ;;  %v1929_v15 = vmul.f32 %v2868_v22, %v1919_v26  ;;  %2873 = vtanh.f32 %v1938_v19  ;;  %v1939_v21 = vmul.f32 0.5, %v1891_v29  ;;  %v1353_v22 = vld [vmem:[#allocation9 + $0x8] sm:$0xff] }
 0x37e   : > { %1984 = vst [vmem:[#allocation6] sm:$0xff] %v1982_v5  ;;  %2875 = vtanh.f32 %v1931_v17  ;;  %v2008_v25 = vsel %vm1980_vm4, %v1928_v28, 0.0  ;;  %v1889_v26 = vadd.f32 %v1879_v8, %v1634_v16  ;;  %v1893_v24 = vadd.f32 %v1883_v4, %v1638_v7 }
 0x37f   : > { %v1983_v23 = vsel %vm1981_vm5, %v1929_v15, %v3845_v37  ;;  %v2009_v27 = vsel %vm1981_vm5, %v1929_v15, 0.0  ;;  %2877 = vtanh.f32 %v1939_v21  ;;  %v1997_v16 = vpop.permute.xlu1 %1996 }
 0x380   : > { %1985 = vst [vmem:[#allocation6 + $0x8] sm:$0xff] %v1983_v23  ;;  %v2010_v9 = vpack.c.bf16 %v2009_v27, %v2008_v25  ;;  %2879 = vtanh.f32 %v1892_v3  ;;  %v1948_v29 = vmul.f32 0.5, %v1889_v26  ;;  %v1949_v13 = vmul.f32 0.5, %v1893_v24 }
 0x381   : > { %vm1999_vm7 = vcmp.eq.s32.totalorder %v1997_v16, 1 }
 0x382   : > { %2013 = vst [vmem:[%s2012_s2] sm:$0xff] %v2010_v9  ;;  %2881 = vtanh.f32 %v1948_v29 }
 0x383   : > { %2883 = vtanh.f32 %v1949_v13 }
 0x384   : > { %v2870_v53 = vpop.eup %2869 }
 0x386   : > { %v2872_v62 = vpop.eup %2871 }
 0x387   : > { %v2874_v28 = vpop.eup %2873  ;;  %v1934_v0 = vmul.f32 0.5, %v2872_v62 }
 0x388   : > { %v2876_v37 = vpop.eup %2875  ;;  %v1942_v10 = vmul.f32 0.5, %v2874_v28 }
 0x389   : > { %v1936_v1 = vadd.f32 0.5, %v1934_v0  ;;  %v1935_v52 = vmul.f32 0.5, %v2876_v37  ;;  %v2878_v12 = vpop.eup %2877 }
 0x38a   : > { %v1944_v18 = vadd.f32 0.5, %v1942_v10  ;;  %v2880_v8 = vpop.eup %2879  ;;  %v1943_v20 = vmul.f32 0.5, %v2878_v12 }
 0x38b   : > { %v1937_v14 = vadd.f32 0.5, %v1935_v52  ;;  %v1958_v4 = vmul.f32 %v2870_v53, %v1936_v1 }
 0x38c   : > { %v1956_v19 = vmul.f32 %v1944_v18, %v1352_v2  ;;  %v1945_v17 = vadd.f32 0.5, %v1943_v20  ;;  %v2882_v23 = vpop.eup %2881 }
 0x38d   : > { %v1959_v5 = vmul.f32 %v2880_v8, %v1937_v14  ;;  %v2884_v7 = vpop.eup %2883  ;;  %v1952_v9 = vmul.f32 0.5, %v2882_v23 }
 0x38e   : > { %v1960_v15 = vadd.f32 %v1958_v4, %v1956_v19  ;;  %v1957_v3 = vmul.f32 %v1945_v17, %v1353_v22  ;;  %v1953_v26 = vmul.f32 0.5, %v2884_v7 }
 0x38f   : > { %v1954_v24 = vadd.f32 0.5, %v1952_v9 }
 0x390   : > { %2885 = vtanh.f32 %v1960_v15  ;;  %v2004_v21 = vsel %vm1998_vm6, %v1960_v15, %v1352_v2  ;;  %v1961_v25 = vadd.f32 %v1959_v5, %v1957_v3  ;;  %v1955_v62 = vadd.f32 0.5, %v1953_v26 }
 0x391   : > { %2006 = vst [vmem:[#allocation9] sm:$0xff] %v2004_v21 }
 0x392   : > { %2887 = vtanh.f32 %v1961_v25  ;;  %v2005_v27 = vsel %vm1999_vm7, %v1961_v25, %v1353_v22 }
 0x393   : > { %2007 = vst [vmem:[#allocation9 + $0x8] sm:$0xff] %v2005_v27 }
 0x39a   : > { %v2886_v29 = vpop.eup %2885 }
 0x39b   : > { %v1964_v53 = vmul.f32 %v2886_v29, %v1954_v24 }
 0x39c   : > { %v2888_v28 = vpop.eup %2887  ;;  %1343 = sbr.rel (!%p1340_p12) target bundleno = 601 (0x259), region = 115 }
 0x39d   : > { %v2000_v0 = vsel %vm1998_vm6, %v1964_v53, %v3915_v11  ;;  %v1965_v13 = vmul.f32 %v2888_v28, %v1955_v62  ;;  %v2014_v37 = vsel %vm1998_vm6, %v1964_v53, 0.0 }
 0x39e   : > { %2002 = vst [vmem:[#allocation8] sm:$0xff] %v2000_v0 }
 0x39f   : > { %v2001_v10 = vsel %vm1999_vm7, %v1965_v13, %v3917_v63  ;;  %v2015_v1 = vsel %vm1999_vm7, %v1965_v13, 0.0 }
 0x3a0   : > { %2003 = vst [vmem:[#allocation8 + $0x8] sm:$0xff] %v2001_v10  ;;  %v2016_v52 = vpack.c.bf16 %v2015_v1, %v2014_v37 }
 0x3a2   : > { %2019 = vst [vmem:[%s2018_s25] sm:$0xff] %v2016_v52 }
 0x3a3 PF:  { %v2889_v11 = vld [vmem:[#allocation26 + $0x40] sm:$0xff]   ;;  %v2891_v2 = vld [vmem:[#allocation26 + $0x48] sm:$0xff]   ;;  %v2893_v12 = vld [vmem:[#allocation26 + $0x50] sm:$0xff]   ;;  %s3189_s26 = smov [#allocation29]  }
 0x3a4   :  { %v2890_v6 = vld [vmem:[#allocation26] sm:$0xff]   ;;  %2634 = vmatprep.subr.bf16.mxu1 %v2889_v11  ;;  %v2892_v63 = vld [vmem:[#allocation26 + $0x8] sm:$0xff]   ;;  %v2894_v18 = vld [vmem:[#allocation26 + $0x10] sm:$0xff]   ;;  %s2402_s29 = sshll.u32 %s3189_s26, 4  ;;  %s2403_s29 = int_to_ptr.vmem [resolvable:$true] %s2402_s29 }
 0x3a5   :  { %2666 = vmatprep.subr.bf16.mxu0 %v2890_v6  ;;  %2635 = vmatpush3.bf16.msra.mxu1 %v2889_v11  ;;  %v2895_v8 = vld [vmem:[#allocation26 + $0x58] sm:$0xff]   ;;  %v2897_v30 = vld [vmem:[#allocation26 + $0x60] sm:$0xff]   ;;  %v2899_v32 = vld [vmem:[#allocation26 + $0x68] sm:$0xff]   ;;  %s3125_s5 = scalar_lea.vmem %s2403_s29, 2048  ;;  %p3130_p0 = scmp.lt.s32.totalorder %s2403_s29, %s2403_s29 }
 0x3a6   :  { %2667 = vmatpush3.bf16.msra.mxu0 %v2890_v6  ;;  %2636 = vmatprep.subr.bf16.mxu1 %v2891_v2  ;;  %v2896_v14 = vld [vmem:[#allocation26 + $0x18] sm:$0xff]   ;;  %v2898_v31 = vld [vmem:[#allocation26 + $0x20] sm:$0xff]   ;;  %v2020_v34 = vld [vmem:[#allocation4] sm:$0xff]  ;;  %p3126_p13 = scmp.ne.s32.totalorder %s2403_s29, %s3125_s5  ;;  %p3131_p1 = scmp.lt.s32.totalorder %s3125_s5, %s3125_s5 }
 0x3a7   :  { %2668 = vmatprep.subr.bf16.mxu0 %v2892_v63  ;;  %v2900_v35 = vld [vmem:[#allocation26 + $0x28] sm:$0xff]   ;;  %2682 = vmatprep.mubr.bf16.mxu0 %v2020_v34  ;;  %v2901_v36 = vld [vmem:[#allocation26 + $0x70] sm:$0xff]   ;;  %v2903_v39 = vld [vmem:[#allocation26 + $0x78] sm:$0xff]  }
 0x3a8   :  { %v2902_v38 = vld [vmem:[#allocation26 + $0x30] sm:$0xff]   ;;  %v2904_v57 = vld [vmem:[#allocation26 + $0x38] sm:$0xff]   ;;  %v2023_v51 = vld [vmem:[#allocation4 + $0x18] sm:$0xff]  ;;  %p3132_p2 = por %p3131_p1, %p3130_p0 }
 0x3a9   :  { %2637 = vmatpush3.bf16.msra.mxu1 %v2891_v2  ;;  %v2028_v33 = vld [vmem:[#allocation5] sm:$0xff]  ;;  %v2029_v40 = vld [vmem:[#allocation5 + $0x8] sm:$0xff]  ;;  %v2030_v41 = vld [vmem:[#allocation5 + $0x10] sm:$0xff] }
 0x3aa   :  { %2669 = vmatpush3.bf16.msra.mxu0 %v2892_v63  ;;  %2638 = vmatprep.subr.bf16.mxu1 %v2893_v12  ;;  %v2021_v60 = vld [vmem:[#allocation4 + $0x8] sm:$0xff]  ;;  %v2022_v59 = vld [vmem:[#allocation4 + $0x10] sm:$0xff]  ;;  %v2031_v42 = vld [vmem:[#allocation5 + $0x18] sm:$0xff]  ;;  %p3133_p3 = pnand %p3132_p2, %p3126_p13 }
 0x3ab   :  { %2670 = vmatprep.subr.bf16.mxu0 %v2894_v18  ;;  %2650 = vmatprep.mubr.bf16.mxu1 %v2028_v33  ;;  %v2032_v45 = vld [vmem:[#allocation5 + $0x20] sm:$0xff]  ;;  %v2033_v54 = vld [vmem:[#allocation5 + $0x28] sm:$0xff]  ;;  %v2034_v47 = vld [vmem:[#allocation5 + $0x30] sm:$0xff] }
 0x3ac   :  { %v2024_v61 = vld [vmem:[#allocation4 + $0x20] sm:$0xff]  ;;  %v2025_v58 = vld [vmem:[#allocation4 + $0x28] sm:$0xff]  ;;  %v2026_v56 = vld [vmem:[#allocation4 + $0x30] sm:$0xff] }
 0x3ad   :  { %2639 = vmatpush3.bf16.msra.mxu1 %v2893_v12  ;;  %v2035_v43 = vld [vmem:[#allocation5 + $0x38] sm:$0xff] }
 0x3ae   :  { %2671 = vmatpush3.bf16.msra.mxu0 %v2894_v18  ;;  %2640 = vmatprep.subr.bf16.mxu1 %v2895_v8  ;;  %v2027_v49 = vld [vmem:[#allocation4 + $0x38] sm:$0xff] }
 0x3af   :  { %2672 = vmatprep.subr.bf16.mxu0 %v2896_v14  ;;  %v3959_v44 = vld [vmem:[#allocation27] ss:$0 sm:$0xff] }
 0x3b1   :  { %2641 = vmatpush3.bf16.msra.mxu1 %v2895_v8 }
 0x3b2   :  { %2673 = vmatpush3.bf16.msra.mxu0 %v2896_v14  ;;  %2642 = vmatprep.subr.bf16.mxu1 %v2897_v30 }
 0x3b3   :  { %2674 = vmatprep.subr.bf16.mxu0 %v2898_v31 }
 0x3b5   :  { %2643 = vmatpush3.bf16.msra.mxu1 %v2897_v30 }
 0x3b6   :  { %2675 = vmatpush3.bf16.msra.mxu0 %v2898_v31  ;;  %2644 = vmatprep.subr.bf16.mxu1 %v2899_v32 }
 0x3b7   :  { %2676 = vmatprep.subr.bf16.mxu0 %v2900_v35 }
 0x3b9   :  { %2645 = vmatpush3.bf16.msra.mxu1 %v2899_v32 }
 0x3ba   :  { %2677 = vmatpush3.bf16.msra.mxu0 %v2900_v35  ;;  %2646 = vmatprep.subr.bf16.mxu1 %v2901_v36 }
 0x3bb   :  { %2678 = vmatprep.subr.bf16.mxu0 %v2902_v38 }
 0x3bd   :  { %2647 = vmatpush3.bf16.msra.mxu1 %v2901_v36 }
 0x3be   :  { %2679 = vmatpush3.bf16.msra.mxu0 %v2902_v38  ;;  %2648 = vmatprep.subr.bf16.mxu1 %v2903_v39 }
 0x3bf   :  { %2680 = vmatprep.subr.bf16.mxu0 %v2904_v57 }
 0x3c1   :  { %2649 = vmatpush3.bf16.msra.mxu1 %v2903_v39 }
 0x3c2   :  { %2681 = vmatpush3.bf16.msra.mxu0 %v2904_v57 }
 0x3c4   :  { %2651 = vmatmul.mubr.bf16.vlgmr.msra.gmra.mrb[0].mxu1 %v2029_v40 }
 0x3c5   :  { %2683 = vmatmul.mubr.bf16.vlgmr.msra.gmra.mrb[0].mxu0 %v2021_v60  ;;  %2654 = vmatprep.mubr.bf16.mxu1 %v2030_v41 }
 0x3c6   :  { %2686 = vmatprep.mubr.bf16.mxu0 %v2022_v59 }
 0x3cc   :  { %2655 = vmatmul.mubr.bf16.gmra.mrb[4].mxu1 %v2031_v42 }
 0x3cd   :  { %2687 = vmatmul.mubr.bf16.gmra.mrb[4].mxu0 %v2023_v51  ;;  %2658 = vmatprep.mubr.bf16.mxu1 %v2032_v45 }
 0x3ce   :  { %2690 = vmatprep.mubr.bf16.mxu0 %v2024_v61 }
 0x3d4   :  { %2659 = vmatmul.mubr.bf16.gmra.mrb[8].mxu1 %v2033_v54 }
 0x3d5   :  { %2691 = vmatmul.mubr.bf16.gmra.mrb[8].mxu0 %v2025_v58  ;;  %2662 = vmatprep.mubr.bf16.mxu1 %v2034_v47 }
 0x3d6   :  { %2694 = vmatprep.mubr.bf16.mxu0 %v2026_v56 }
 0x3dc   :  { %2663 = vmatmul.mubr.bf16.gmra.mrb[12].mxu1 %v2035_v43 }
 0x3dd   :  { %2695 = vmatmul.mubr.bf16.gmra.mrb[12].mxu0 %v2027_v49 }
 0x497   :  { %v2652_v55 = vpop.f32.mrb[0].mxu1 }
 0x498   :  { %v2684_v48 = vpop.f32.mrb[0].mxu0  ;;  %v2150_v50 = vpop.f32.mrb[1].mxu1 }
 0x499   :  { %v2304_v46 = vadd.f32 %v2684_v48, %v2652_v55  ;;  %v2295_v20 = vpop.f32.mrb[1].mxu0  ;;  %v2653_v4 = vpop.f32.mrb[2].mxu1 }
 0x49a   :  { %v2296_v19 = vadd.f32 %v2295_v20, %v2150_v50  ;;  %v2685_v22 = vpop.f32.mrb[2].mxu0  ;;  %v2153_v17 = vpop.f32.mrb[3].mxu1 }
 0x49b   :  { %v2367_v16 = vadd.f32 %v3959_v44, %v2304_v46  ;;  %v2307_v5 = vadd.f32 %v2685_v22, %v2653_v4  ;;  %v2298_v15 = vpop.f32.mrb[3].mxu0 }
 0x49c   :  { %v2365_v3 = vadd.f32 %v3959_v44, %v2296_v19  ;;  %v2299_v21 = vadd.f32 %v2298_v15, %v2153_v17 }
 0x49d   :  { %2383 = vst [vmem:[#allocation29 + $0x10] sm:$0xff] %v2367_v16  ;;  %v2368_v25 = vadd.f32 %v3959_v44, %v2307_v5 }
 0x49e   :  { %2381 = vst [vmem:[#allocation29] sm:$0xff] %v2365_v3  ;;  %v2366_v23 = vadd.f32 %v3959_v44, %v2299_v21 }
 0x49f   :  { %2384 = vst [vmem:[#allocation29 + $0x18] sm:$0xff] %v2368_v25  ;;  %v2656_v27 = vpop.f32.mrb[4].mxu1 }
 0x4a0   :  { %2382 = vst [vmem:[#allocation29 + $0x8] sm:$0xff] %v2366_v23  ;;  %v2688_v7 = vpop.f32.mrb[4].mxu0  ;;  %v2166_v9 = vpop.f32.mrb[5].mxu1 }
 0x4a1   :  { %v2320_v26 = vadd.f32 %v2688_v7, %v2656_v27  ;;  %v2311_v24 = vpop.f32.mrb[5].mxu0  ;;  %v2657_v29 = vpop.f32.mrb[6].mxu1 }
 0x4a2   :  { %v2312_v53 = vadd.f32 %v2311_v24, %v2166_v9  ;;  %v2689_v62 = vpop.f32.mrb[6].mxu0  ;;  %v2169_v28 = vpop.f32.mrb[7].mxu1 }
 0x4a3   :  { %v2371_v0 = vadd.f32 %v3959_v44, %v2320_v26  ;;  %v2323_v13 = vadd.f32 %v2689_v62, %v2657_v29  ;;  %v2314_v37 = vpop.f32.mrb[7].mxu0 }
 0x4a4   :  { %v2369_v10 = vadd.f32 %v3959_v44, %v2312_v53  ;;  %v2315_v1 = vadd.f32 %v2314_v37, %v2169_v28 }
 0x4a5   :  { %2387 = vst [vmem:[#allocation29 + $0x30] sm:$0xff] %v2371_v0  ;;  %v2372_v52 = vadd.f32 %v3959_v44, %v2323_v13 }
 0x4a6   :  { %2385 = vst [vmem:[#allocation29 + $0x20] sm:$0xff] %v2369_v10  ;;  %v2370_v11 = vadd.f32 %v3959_v44, %v2315_v1 }
 0x4a7   :  { %2388 = vst [vmem:[#allocation29 + $0x38] sm:$0xff] %v2372_v52  ;;  %v2660_v6 = vpop.f32.mrb[8].mxu1 }
 0x4a8   :  { %2386 = vst [vmem:[#allocation29 + $0x28] sm:$0xff] %v2370_v11  ;;  %v2692_v2 = vpop.f32.mrb[8].mxu0  ;;  %v2182_v63 = vpop.f32.mrb[9].mxu1 }
 0x4a9   :  { %v2336_v12 = vadd.f32 %v2692_v2, %v2660_v6  ;;  %v2327_v18 = vpop.f32.mrb[9].mxu0  ;;  %v2661_v8 = vpop.f32.mrb[10].mxu1 }
 0x4aa   :  { %v2328_v14 = vadd.f32 %v2327_v18, %v2182_v63  ;;  %v2693_v30 = vpop.f32.mrb[10].mxu0  ;;  %v2185_v31 = vpop.f32.mrb[11].mxu1 }
 0x4ab   :  { %v2375_v32 = vadd.f32 %v3959_v44, %v2336_v12  ;;  %v2339_v33 = vadd.f32 %v2693_v30, %v2661_v8  ;;  %v2330_v34 = vpop.f32.mrb[11].mxu0 }
 0x4ac   :  { %v2373_v35 = vadd.f32 %v3959_v44, %v2328_v14  ;;  %v2331_v36 = vadd.f32 %v2330_v34, %v2185_v31 }
 0x4ad   :  { %2391 = vst [vmem:[#allocation29 + $0x50] sm:$0xff] %v2375_v32  ;;  %v2376_v38 = vadd.f32 %v3959_v44, %v2339_v33 }
 0x4ae   :  { %2389 = vst [vmem:[#allocation29 + $0x40] sm:$0xff] %v2373_v35  ;;  %v2374_v39 = vadd.f32 %v3959_v44, %v2331_v36 }
 0x4af   :  { %2392 = vst [vmem:[#allocation29 + $0x58] sm:$0xff] %v2376_v38  ;;  %v2664_v57 = vpop.f32.mrb[12].mxu1 }
 0x4b0   :  { %2390 = vst [vmem:[#allocation29 + $0x48] sm:$0xff] %v2374_v39  ;;  %v2696_v40 = vpop.f32.mrb[12].mxu0  ;;  %v2198_v60 = vpop.f32.mrb[13].mxu1 }
 0x4b1   :  { %v2352_v41 = vadd.f32 %v2696_v40, %v2664_v57  ;;  %v2343_v59 = vpop.f32.mrb[13].mxu0  ;;  %v2665_v42 = vpop.f32.mrb[14].mxu1 }
 0x4b2   :  { %v2344_v51 = vadd.f32 %v2343_v59, %v2198_v60  ;;  %v2697_v45 = vpop.f32.mrb[14].mxu0  ;;  %v2201_v61 = vpop.f32.mrb[15].mxu1 }
 0x4b3   :  { %v2379_v54 = vadd.f32 %v3959_v44, %v2352_v41  ;;  %v2355_v58 = vadd.f32 %v2697_v45, %v2665_v42  ;;  %v2346_v47 = vpop.f32.mrb[15].mxu0 }
 0x4b4   :  { %v2377_v56 = vadd.f32 %v3959_v44, %v2344_v51  ;;  %v2347_v43 = vadd.f32 %v2346_v47, %v2201_v61 }
 0x4b5   :  { %2395 = vst [vmem:[#allocation29 + $0x70] sm:$0xff] %v2379_v54  ;;  %v2380_v49 = vadd.f32 %v3959_v44, %v2355_v58 }
 0x4b6   :  { %2393 = vst [vmem:[#allocation29 + $0x60] sm:$0xff] %v2377_v56  ;;  %v2378_v55 = vadd.f32 %v3959_v44, %v2347_v43 }
 0x4b7   :  { %2396 = vst [vmem:[#allocation29 + $0x78] sm:$0xff] %v2380_v49 }
 0x4b8   :  { %2394 = vst [vmem:[#allocation29 + $0x68] sm:$0xff] %v2378_v55 }
 0x4b9   :  { %3136 = shalt.err (!%p3133_p3)
}
 0x4ba   :  { %s3137_s28 = scalar_lea.hbm %s4003_s11, 2048 }
 0x4bb   :  { %p3138_p4 = scmp.ne.s32.totalorder %s4003_s11, %s3137_s28  ;;  %p3141_p5 = scmp.lt.u32.totalorder %s3137_s28, %s4003_s11 }
 0x4bd   :  { %p3143_p6 = pnand %p3141_p5, %p3138_p4 }
 0x4bf   :  { %3146 = shalt.err (!%p3143_p6)
}
 0x4c0   :  { %2408 = dma.vmem_to_hbm [thread:$0]  %s2403_s29, 2048, %s4003_s11, [#allocation14], %s3178_s8, %s3178_s8, %s3179_s22  }
 0x4c1   :  { %3163 = dma.done.wait [#allocation14], 2048  }
 0x4c2   :  { %3164 = vsyncadd [#allocation14], 4294965248 }
 0x4c3   :  { %2412 = vsyncpa [#allocation13], 1 }
 0x4c4   :  { %2413 = vsyncpa [#allocation16], 1 }
 0x4c5   :  { %2414 = vsyncpa [#allocation19], 1 }
 0x4c6   :  { %2415 = vsyncpa [#allocation22], 1 }
 0x4c7   :  { %2416 = vsyncpa [#allocation25], 1 }
 0x4c8   :  { %2417 = vsyncpa [#allocation28], 1 }
 0x4c9   :  { %2418 = vsyncpa [#allocation14], 1 }

</bundles_post_ra>
